<compile_context>
chip_gen: v7x
topology: tpu7x:2x2x1
jax: 0.10.0
libtpu: 0.0.40
codegen_flags: <defaults>
</compile_context>

<pallas_src>
import functools
import math

import jax
import jax.numpy as jnp
from jax import lax
from jax.experimental import pallas as pl
from jax.experimental.pallas import tpu as pltpu


# ---------------------------------------------------------------------------
# Kernel 1: fused RMSNorm + QKV projection (output tiled over N, 'parallel').
# ---------------------------------------------------------------------------
def _norm_qkv_kernel(x_ref, w_ref, wqkv_ref, o_ref, *, eps):
    x = x_ref[...].astype(jnp.float32)                       # [M, D]
    ms = jnp.mean(x * x, axis=-1, keepdims=True)
    xn = (x * lax.rsqrt(ms + eps)) * w_ref[...].astype(jnp.float32)
    o_ref[...] = jnp.dot(xn, wqkv_ref[...].astype(jnp.float32),
                         preferred_element_type=jnp.float32).astype(o_ref.dtype)


def norm_qkv(x2d, w_norm, wqkv, eps, tn=256):
    M, D = x2d.shape
    N = wqkv.shape[1]
    if N % tn != 0:
        tn = N
    return pl.pallas_call(
        functools.partial(_norm_qkv_kernel, eps=eps),
        out_shape=jax.ShapeDtypeStruct((M, N), x2d.dtype),
        grid=(N // tn,),
        in_specs=[pl.BlockSpec((M, D), lambda j: (0, 0)),
                  pl.BlockSpec((1, D), lambda j: (0, 0)),
                  pl.BlockSpec((D, tn), lambda j: (0, j))],
        out_specs=pl.BlockSpec((M, tn), lambda j: (0, j)),
        compiler_params=pltpu.CompilerParams(dimension_semantics=("parallel",)),
    )(x2d, w_norm.reshape(1, D), wqkv)


# ---------------------------------------------------------------------------
# Kernel 2: GQA decode attention with in-place KV-cache write (aliased output).
# ---------------------------------------------------------------------------
def _attn_decode_kernel(q_ref, kn_ref, vn_ref, ck_ref, cv_ref,
                        o_ref, ck_out_ref, cv_out_ref, *, scale, n_rep):
    # per-batch block shapes:
    #   q_ref [1, Hq, hd]; kn/vn [1, Hkv, hd]; ck/cv [1, T, Hkv, hd]
    #   o_ref [1, Hq, hd]; ck_out/cv_out [1, 1, Hkv, hd] (aliased with the cache)
    T = ck_ref.shape[1]
    Hkv, hd = ck_ref.shape[2], ck_ref.shape[3]

    k_new = kn_ref[0].astype(jnp.float32)                    # [Hkv, hd]
    v_new = vn_ref[0].astype(jnp.float32)

    # in-place KV cache update: only this (batch, start_pos) row is written back
    ck_out_ref[...] = k_new[None, None].astype(ck_out_ref.dtype)
    cv_out_ref[...] = v_new[None, None].astype(cv_out_ref.dtype)

    k = ck_ref[0].astype(jnp.float32)                        # [T, Hkv, hd]
    v = cv_ref[0].astype(jnp.float32)
    # row T-1 (== start_pos) of the prefetched cache block is stale -> splice in
    # the freshly computed K/V for the current token.
    t_idx = lax.broadcasted_iota(jnp.int32, (T, Hkv, hd), 0)
    k = jnp.where(t_idx == T - 1, k_new[None], k)
    v = jnp.where(t_idx == T - 1, v_new[None], v)

    q = q_ref[0].astype(jnp.float32)                         # [Hq, hd]

    # Grouped-query attention: kv head g serves query heads [g*n_rep, (g+1)*n_rep)
    # (matches torch repeat_kv ordering).  Static unroll over the few kv heads;
    # each group is a pair of MXU matmuls with T on the lane axis.
    outs = []
    for g in range(Hkv):
        qg = q[g * n_rep:(g + 1) * n_rep, :]                 # [n_rep, hd]
        kg = k[:, g, :]                                      # [T, hd]
        vg = v[:, g, :]
        s = lax.dot_general(qg, kg, (((1,), (1,)), ((), ())),
                            preferred_element_type=jnp.float32) * scale   # [n_rep, T]
        m = jnp.max(s, axis=-1, keepdims=True)
        p = jnp.exp(s - m)
        p = p / jnp.sum(p, axis=-1, keepdims=True)
        outs.append(jnp.dot(p, vg, preferred_element_type=jnp.float32))   # [n_rep, hd]
    o = jnp.concatenate(outs, axis=0)                        # [Hq, hd]
    o_ref[...] = o[None].astype(o_ref.dtype)


def attention_decode(q, k_new, v_new, cache_k, cache_v, *, start_pos, scale, n_rep):
    B, Hq, hd = q.shape
    Hkv = k_new.shape[1]
    T = start_pos + 1                                        # seq_len == 1
    return pl.pallas_call(
        functools.partial(_attn_decode_kernel, scale=scale, n_rep=n_rep),
        out_shape=(jax.ShapeDtypeStruct((B, Hq, hd), q.dtype),
                   jax.ShapeDtypeStruct(cache_k.shape, cache_k.dtype),
                   jax.ShapeDtypeStruct(cache_v.shape, cache_v.dtype)),
        grid=(B,),
        in_specs=[pl.BlockSpec((1, Hq, hd), lambda b: (b, 0, 0)),
                  pl.BlockSpec((1, Hkv, hd), lambda b: (b, 0, 0)),
                  pl.BlockSpec((1, Hkv, hd), lambda b: (b, 0, 0)),
                  pl.BlockSpec((1, T, Hkv, hd), lambda b: (b, 0, 0, 0)),
                  pl.BlockSpec((1, T, Hkv, hd), lambda b: (b, 0, 0, 0))],
        out_specs=(pl.BlockSpec((1, Hq, hd), lambda b: (b, 0, 0)),
                   pl.BlockSpec((1, 1, Hkv, hd), lambda b: (b, start_pos, 0, 0)),
                   pl.BlockSpec((1, 1, Hkv, hd), lambda b: (b, start_pos, 0, 0))),
        input_output_aliases={3: 1, 4: 2},                   # cache_k/v updated in place
        compiler_params=pltpu.CompilerParams(dimension_semantics=("parallel",)),
    )(q, k_new, v_new, cache_k, cache_v)


# ---------------------------------------------------------------------------
# Kernel 3: wo projection + residual + RMSNorm + SwiGLU FFN, hidden-dim tiled
# as a reduction axis with an f32 VMEM accumulator.
# ---------------------------------------------------------------------------
def _wo_ffn_kernel(x_ref, attn_ref, wo_ref, wn_ref, w1_ref, w3_ref, w2_ref,
                   o_ref, h_sc, hn_sc, acc_sc, *, eps):
    j = pl.program_id(0)

    @pl.when(j == 0)
    def _():
        h = x_ref[...].astype(jnp.float32) + jnp.dot(
            attn_ref[...].astype(jnp.float32), wo_ref[...].astype(jnp.float32),
            preferred_element_type=jnp.float32)
        h_sc[...] = h
        ms = jnp.mean(h * h, axis=-1, keepdims=True)
        hn_sc[...] = (h * lax.rsqrt(ms + eps)) * wn_ref[...].astype(jnp.float32)
        acc_sc[...] = jnp.zeros_like(acc_sc)

    hn = hn_sc[...]
    a = jnp.dot(hn, w1_ref[...].astype(jnp.float32), preferred_element_type=jnp.float32)
    gated = (a * jax.nn.sigmoid(a)) * jnp.dot(
        hn, w3_ref[...].astype(jnp.float32), preferred_element_type=jnp.float32)
    acc_sc[...] += jnp.dot(gated, w2_ref[...].astype(jnp.float32),
                           preferred_element_type=jnp.float32)

    @pl.when(j == pl.num_programs(0) - 1)
    def _():
        o_ref[...] = (h_sc[...] + acc_sc[...]).astype(o_ref.dtype)


def wo_ffn(x2d, attn2d, wo, ffn_norm_w, w1, w3, w2, eps, th=256):
    M, D = x2d.shape
    Nq = attn2d.shape[1]
    H = w1.shape[1]
    if H % th != 0:
        th = H
    return pl.pallas_call(
        functools.partial(_wo_ffn_kernel, eps=eps),
        out_shape=jax.ShapeDtypeStruct((M, D), x2d.dtype),
        grid=(H // th,),
        in_specs=[pl.BlockSpec((M, D), lambda j: (0, 0)),
                  pl.BlockSpec((M, Nq), lambda j: (0, 0)),
                  pl.BlockSpec((Nq, D), lambda j: (0, 0)),
                  pl.BlockSpec((1, D), lambda j: (0, 0)),
                  pl.BlockSpec((D, th), lambda j: (0, j)),
                  pl.BlockSpec((D, th), lambda j: (0, j)),
                  pl.BlockSpec((th, D), lambda j: (j, 0))],
        out_specs=pl.BlockSpec((M, D), lambda j: (0, 0)),
        scratch_shapes=[pltpu.VMEM((M, D), jnp.float32),     # h (residual)
                        pltpu.VMEM((M, D), jnp.float32),     # rmsnorm(h)
                        pltpu.VMEM((M, D), jnp.float32)],    # FFN accumulator
        compiler_params=pltpu.CompilerParams(dimension_semantics=("arbitrary",)),
    )(x2d, attn2d, wo, ffn_norm_w.reshape(1, D), w1, w3, w2)


# ------------------------------- JAX glue ----------------------------------
def apply_rope(x, cos, sin):
    # x: [B, S, H, hd]; cos/sin: [S, hd//2] -- equivalent to torch view_as_complex mul
    B, S, H, hd = x.shape
    xr = x.astype(jnp.float32).reshape(B, S, H, hd // 2, 2)
    xe, xo = xr[..., 0], xr[..., 1]
    c = cos[None, :, None, :]
    s = sin[None, :, None, :]
    re = xe * c - xo * s
    im = xe * s + xo * c
    return jnp.stack([re, im], axis=-1).reshape(B, S, H, hd).astype(x.dtype)


def make_forward(cfg, start_pos):
    Hq, Hkv, hd = cfg["n_heads"], cfg["n_kv_heads"], cfg["head_dim"]
    n_rep, eps = cfg["n_rep"], cfg["norm_eps"]
    scale = 1.0 / math.sqrt(hd)

    def fwd(params, x, cos, sin, cache_k, cache_v):
        B, S, D = x.shape
        assert S == 1, "decode kernels assume seq_len == 1"
        nq, nkv = Hq * hd, Hkv * hd
        qkv = norm_qkv(x.reshape(B, D), params["attn_norm_w"], params["wqkv"], eps)
        xq = apply_rope(qkv[:, :nq].reshape(B, S, Hq, hd), cos, sin)
        xk = apply_rope(qkv[:, nq:nq + nkv].reshape(B, S, Hkv, hd), cos, sin)
        xv = qkv[:, nq + nkv:].reshape(B, S, Hkv, hd)
        attn, new_ck, new_cv = attention_decode(
            xq[:, 0], xk[:, 0], xv[:, 0], cache_k, cache_v,
            start_pos=start_pos, scale=scale, n_rep=n_rep)
        out = wo_ffn(x.reshape(B, D), attn.reshape(B, nq),
                     params["wo"], params["ffn_norm_w"],
                     params["w1"], params["w3"], params["w2"], eps)
        return out.reshape(B, S, D), new_ck, new_cv

    # Donate the KV caches so the Pallas in-place update (input_output_aliases)
    # carries through the jit boundary without a defensive full-cache copy.
    return jax.jit(fwd, donate_argnums=(4, 5))


# --------------------------- pure-JAX reference ------------------------------
def reference_forward(params, x, start_pos, cos, sin, cache_k, cache_v, cfg):
    B, S, D = x.shape
    Hq, Hkv, hd = cfg["n_heads"], cfg["n_kv_heads"], cfg["head_dim"]
    n_rep, eps = cfg["n_rep"], cfg["norm_eps"]

    def rms(y, w):
        ms = jnp.mean(y * y, axis=-1, keepdims=True)
        return w * (y * lax.rsqrt(ms + eps))

    xn = rms(x, params["attn_norm_w"])
    xq = (xn @ params["wq"]).reshape(B, S, Hq, hd)
    xk = (xn @ params["wk"]).reshape(B, S, Hkv, hd)
    xv = (xn @ params["wv"]).reshape(B, S, Hkv, hd)
    xq = apply_rope(xq, cos, sin)
    xk = apply_rope(xk, cos, sin)
    cache_k = lax.dynamic_update_slice(cache_k, xk, (0, start_pos, 0, 0))
    cache_v = lax.dynamic_update_slice(cache_v, xv, (0, start_pos, 0, 0))
    T = start_pos + S
    keys = jnp.repeat(cache_k[:B, :T], n_rep, axis=2)
    values = jnp.repeat(cache_v[:B, :T], n_rep, axis=2)
    scores = jnp.einsum("bshd,bthd->bsht", xq, keys) / math.sqrt(hd)
    probs = jax.nn.softmax(scores, axis=-1)
    attn = jnp.einsum("bsht,bthd->bshd", probs, values).reshape(B, S, Hq * hd)
    h = x + attn @ params["wo"]
    hn = rms(h, params["ffn_norm_w"])
    a = hn @ params["w1"]
    ffn = ((a * jax.nn.sigmoid(a)) * (hn @ params["w3"])) @ params["w2"]
    return h + ffn, cache_k, cache_v


# ------------------------------------ main -----------------------------------
if __name__ == "__main__":
    # Small ModelArgs-consistent config (the per-layer EncoderBlock decode step).
    # TODO(synk): token embedding lookup, the n_layers stack and the final
    # model-level RMSNorm + vocab projection are left to standard XLA; this
    # script kernelizes the repeated EncoderBlock unit.
    dim = 256
    n_heads = 4
    n_kv_heads = 2
    head_dim = dim // n_heads                  # 64
    multiple_of = 128
    hidden_dim = 4 * dim
    hidden_dim = int(2 * hidden_dim / 3)
    hidden_dim = multiple_of * ((hidden_dim + multiple_of - 1) // multiple_of)  # 768
    max_batch_size = 4
    max_seq_len = 16
    norm_eps = 1e-5
    batch = 2
    seq_len = 1
    start_pos = 3

    cfg = dict(n_heads=n_heads, n_kv_heads=n_kv_heads, head_dim=head_dim,
               n_rep=n_heads // n_kv_heads, norm_eps=norm_eps)

    key = jax.random.PRNGKey(0)
    ks = jax.random.split(key, 8)

    def init(k, shape):
        return 0.02 * jax.random.normal(k, shape, jnp.float32)

    params = {
        "wq": init(ks[0], (dim, n_heads * head_dim)),
        "wk": init(ks[1], (dim, n_kv_heads * head_dim)),
        "wv": init(ks[2], (dim, n_kv_heads * head_dim)),
        "wo": init(ks[3], (n_heads * head_dim, dim)),
        "w1": init(ks[4], (dim, hidden_dim)),
        "w3": init(ks[5], (dim, hidden_dim)),
        "w2": init(ks[6], (hidden_dim, dim)),
        "attn_norm_w": jnp.ones((dim,), jnp.float32),
        "ffn_norm_w": jnp.ones((dim,), jnp.float32),
    }
    # fused QKV weight for the Pallas path: [D, Hq*hd + 2*Hkv*hd] = wq | wk | wv
    kparams = {
        "wqkv": jnp.concatenate([params["wq"], params["wk"], params["wv"]], axis=1),
        "wo": params["wo"], "w1": params["w1"], "w3": params["w3"], "w2": params["w2"],
        "attn_norm_w": params["attn_norm_w"], "ffn_norm_w": params["ffn_norm_w"],
    }

    x = jax.random.normal(ks[7], (batch, seq_len, dim), jnp.float32)
    cache_k = jnp.zeros((max_batch_size, max_seq_len, n_kv_heads, head_dim), jnp.float32)
    cache_v = jnp.zeros_like(cache_k)

    # rotary frequencies for positions [start_pos, start_pos + seq_len)
    pos = jnp.arange(start_pos, start_pos + seq_len, dtype=jnp.float32)
    inv_freq = 1.0 / (10000.0 ** (jnp.arange(0, head_dim, 2, dtype=jnp.float32) / head_dim))
    angles = pos[:, None] * inv_freq[None, :]
    cos, sin = jnp.cos(angles), jnp.sin(angles)

    # pure-JAX reference first (the caches are donated to the kernel call below)
    ref_out, ref_ck, ref_cv = reference_forward(
        params, x, start_pos, cos, sin, cache_k, cache_v, cfg)
    ref_out = jax.block_until_ready(ref_out)

    fwd = make_forward(cfg, start_pos)
    out, new_ck, new_cv = fwd(kparams, x, cos, sin, cache_k, cache_v)
    out = jax.block_until_ready(out)

    assert out.shape == (batch, seq_len, dim)
    assert jnp.allclose(out, ref_out, atol=5e-3, rtol=5e-3), "output mismatch vs reference"
    assert jnp.allclose(new_ck, ref_ck, atol=5e-3, rtol=5e-3), "cache_k mismatch vs reference"
    assert jnp.allclose(new_cv, ref_cv, atol=5e-3, rtol=5e-3), "cache_v mismatch vs reference"
    print("KERNEL_OK")
</pallas_src>

<mosaic_0001>
module attributes {stable_mosaic.version = 11 : i64} {
  func.func @_norm_qkv_kernel(%arg0: i32, %arg1: memref<2x256xf32, #tpu.memory_space<vmem>>, %arg2: memref<1x256xf32, #tpu.memory_space<vmem>>, %arg3: memref<256x256xf32, #tpu.memory_space<vmem>>, %arg4: memref<2x256xf32, #tpu.memory_space<vmem>>) attributes {dimension_semantics = [#tpu.dimension_semantics<parallel>], iteration_bounds = array<i64: 2>, scalar_prefetch = 0 : i64, scratch_operands = 0 : i64, tpu.core_type = #tpu.core_type<tc>, window_params = [{pipeline_mode = #tpu.pipeline_mode<synchronous>, transform_indices = @transform_0, window_bounds = array<i64: 2, 256>}, {pipeline_mode = #tpu.pipeline_mode<synchronous>, transform_indices = @transform_1, window_bounds = array<i64: 1, 256>}, {transform_indices = @transform_2, window_bounds = array<i64: 256, 256>}, {transform_indices = @transform_3, window_bounds = array<i64: 2, 256>}]} {
    %c0 = arith.constant 0 : index
    %c0_0 = arith.constant 0 : index
    %0 = vector.load %arg1[%c0, %c0_0] : memref<2x256xf32, #tpu.memory_space<vmem>>, vector<2x256xf32>
    %1 = arith.mulf %0, %0 : vector<2x256xf32>
    %cst = arith.constant dense<0.000000e+00> : vector<2xf32>
    %2 = vector.multi_reduction <add>, %1, %cst [1] : vector<2x256xf32> to vector<2xf32>
    %3 = vector.shape_cast %2 : vector<2xf32> to vector<2x1xf32>
    %cst_1 = arith.constant 2.560000e+02 : f32
    %4 = vector.broadcast %cst_1 : f32 to vector<2x1xf32>
    %5 = arith.divf %3, %4 : vector<2x1xf32>
    %cst_2 = arith.constant 9.99999974E-6 : f32
    %6 = vector.broadcast %cst_2 : f32 to vector<2x1xf32>
    %7 = arith.addf %5, %6 : vector<2x1xf32>
    %8 = math.rsqrt %7 : vector<2x1xf32>
    %9 = vector.broadcast %8 : vector<2x1xf32> to vector<2x256xf32>
    %10 = arith.mulf %0, %9 : vector<2x256xf32>
    %c0_3 = arith.constant 0 : index
    %c0_4 = arith.constant 0 : index
    %11 = vector.load %arg2[%c0_3, %c0_4] : memref<1x256xf32, #tpu.memory_space<vmem>>, vector<1x256xf32>
    %12 = vector.broadcast %11 : vector<1x256xf32> to vector<2x256xf32>
    %13 = arith.mulf %10, %12 : vector<2x256xf32>
    %c0_5 = arith.constant 0 : index
    %c0_6 = arith.constant 0 : index
    %14 = vector.load %arg3[%c0_5, %c0_6] : memref<256x256xf32, #tpu.memory_space<vmem>>, vector<256x256xf32>
    %cst_7 = arith.constant dense<0.000000e+00> : vector<2x256xf32>
    %15 = tpu.matmul %13, %14, %cst_7 {dimension_numbers = #tpu.dot_dimension_numbers<[1], [0], [0], [1], [0, 0, 1, 1], [], []>} : vector<2x256xf32>, vector<256x256xf32>, vector<2x256xf32> -> vector<2x256xf32>
    %c0_8 = arith.constant 0 : index
    %c0_9 = arith.constant 0 : index
    %16 = vector.load %arg4[%c0_8, %c0_9] : memref<2x256xf32, #tpu.memory_space<vmem>>, vector<2x256xf32>
    tpu.vector_store %arg4[%c0_8, %c0_9], %15 {strides = array<i32>} : memref<2x256xf32, #tpu.memory_space<vmem>>, vector<2x256xf32>,
    return
  }
  func.func @transform_0(%arg0: i32) -> (i32, i32) {
    %c0_i32 = arith.constant 0 : i32
    %c0_i32_0 = arith.constant 0 : i32
    %c0_i32_1 = arith.constant 0 : i32
    return %c0_i32, %c0_i32_0 : i32, i32
  }
  func.func @transform_1(%arg0: i32) -> (i32, i32) {
    %c0_i32 = arith.constant 0 : i32
    %c0_i32_0 = arith.constant 0 : i32
    %c0_i32_1 = arith.constant 0 : i32
    return %c0_i32, %c0_i32_0 : i32, i32
  }
  func.func @transform_2(%arg0: i32) -> (i32, i32) {
    %c0_i32 = arith.constant 0 : i32
    %c0_i32_0 = arith.constant 0 : i32
    return %c0_i32, %arg0 : i32, i32
  }
  func.func @transform_3(%arg0: i32) -> (i32, i32) {
    %c0_i32 = arith.constant 0 : i32
    %c0_i32_0 = arith.constant 0 : i32
    return %c0_i32, %arg0 : i32, i32
  }
}

module attributes {stable_mosaic.version = 11 : i64} {
  func.func @_attn_decode_kernel(%arg0: i32, %arg1: memref<1x4x64xf32, #tpu.memory_space<vmem>>, %arg2: memref<1x2x64xf32, #tpu.memory_space<vmem>>, %arg3: memref<1x2x64xf32, #tpu.memory_space<vmem>>, %arg4: memref<1x4x2x64xf32, #tpu.memory_space<vmem>>, %arg5: memref<1x4x2x64xf32, #tpu.memory_space<vmem>>, %arg6: memref<1x4x64xf32, #tpu.memory_space<vmem>>, %arg7: memref<1x1x2x64xf32, #tpu.memory_space<vmem>>, %arg8: memref<1x1x2x64xf32, #tpu.memory_space<vmem>>) attributes {dimension_semantics = [#tpu.dimension_semantics<parallel>], iteration_bounds = array<i64: 2>, scalar_prefetch = 0 : i64, scratch_operands = 0 : i64, tpu.core_type = #tpu.core_type<tc>, window_params = [{transform_indices = @transform_0, window_bounds = array<i64: 1, 4, 64>}, {transform_indices = @transform_1, window_bounds = array<i64: 1, 2, 64>}, {transform_indices = @transform_2, window_bounds = array<i64: 1, 2, 64>}, {transform_indices = @transform_3, window_bounds = array<i64: 1, 4, 2, 64>}, {transform_indices = @transform_4, window_bounds = array<i64: 1, 4, 2, 64>}, {transform_indices = @transform_5, window_bounds = array<i64: 1, 4, 64>}, {transform_indices = @transform_6, window_bounds = array<i64: 1, 1, 2, 64>}, {transform_indices = @transform_7, window_bounds = array<i64: 1, 1, 2, 64>}]} {
    %c0 = arith.constant 0 : index
    %c0_0 = arith.constant 0 : index
    %c0_1 = arith.constant 0 : index
    %0 = vector.load %arg2[%c0, %c0_0, %c0_1] : memref<1x2x64xf32, #tpu.memory_space<vmem>>, vector<1x2x64xf32>
    %1 = vector.shape_cast %0 : vector<1x2x64xf32> to vector<2x64xf32>
    %c0_2 = arith.constant 0 : index
    %c0_3 = arith.constant 0 : index
    %c0_4 = arith.constant 0 : index
    %2 = vector.load %arg3[%c0_2, %c0_3, %c0_4] : memref<1x2x64xf32, #tpu.memory_space<vmem>>, vector<1x2x64xf32>
    %3 = vector.shape_cast %2 : vector<1x2x64xf32> to vector<2x64xf32>
    %4 = vector.shape_cast %1 : vector<2x64xf32> to vector<1x1x2x64xf32>
    %c0_5 = arith.constant 0 : index
    %c0_6 = arith.constant 0 : index
    %c0_7 = arith.constant 0 : index
    %c0_8 = arith.constant 0 : index
    %5 = vector.load %arg7[%c0_5, %c0_6, %c0_7, %c0_8] : memref<1x1x2x64xf32, #tpu.memory_space<vmem>>, vector<1x1x2x64xf32>
    tpu.vector_store %arg7[%c0_5, %c0_6, %c0_7, %c0_8], %4 {strides = array<i32>} : memref<1x1x2x64xf32, #tpu.memory_space<vmem>>, vector<1x1x2x64xf32>,
    %6 = vector.shape_cast %3 : vector<2x64xf32> to vector<1x1x2x64xf32>
    %c0_9 = arith.constant 0 : index
    %c0_10 = arith.constant 0 : index
    %c0_11 = arith.constant 0 : index
    %c0_12 = arith.constant 0 : index
    %7 = vector.load %arg8[%c0_9, %c0_10, %c0_11, %c0_12] : memref<1x1x2x64xf32, #tpu.memory_space<vmem>>, vector<1x1x2x64xf32>
    tpu.vector_store %arg8[%c0_9, %c0_10, %c0_11, %c0_12], %6 {strides = array<i32>} : memref<1x1x2x64xf32, #tpu.memory_space<vmem>>, vector<1x1x2x64xf32>,
    %c0_13 = arith.constant 0 : index
    %c0_14 = arith.constant 0 : index
    %c0_15 = arith.constant 0 : index
    %c0_16 = arith.constant 0 : index
    %8 = vector.load %arg4[%c0_13, %c0_14, %c0_15, %c0_16] : memref<1x4x2x64xf32, #tpu.memory_space<vmem>>, vector<1x4x2x64xf32>
    %9 = vector.shape_cast %8 : vector<1x4x2x64xf32> to vector<4x2x64xf32>
    %c0_17 = arith.constant 0 : index
    %c0_18 = arith.constant 0 : index
    %c0_19 = arith.constant 0 : index
    %c0_20 = arith.constant 0 : index
    %10 = vector.load %arg5[%c0_17, %c0_18, %c0_19, %c0_20] : memref<1x4x2x64xf32, #tpu.memory_space<vmem>>, vector<1x4x2x64xf32>
    %11 = vector.shape_cast %10 : vector<1x4x2x64xf32> to vector<4x2x64xf32>
    %12 = tpu.iota {dimensions = array<i32: 0>} : vector<4x2x64xi32>
    %c3_i32 = arith.constant 3 : i32
    %13 = vector.broadcast %c3_i32 : i32 to vector<4x2x64xi32>
    %14 = arith.cmpi eq, %12, %13 : vector<4x2x64xi32>
    %15 = vector.shape_cast %1 : vector<2x64xf32> to vector<1x2x64xf32>
    %16 = vector.shape_cast %15 : vector<1x2x64xf32> to vector<1x2x64xf32>
    %17 = vector.broadcast %16 : vector<1x2x64xf32> to vector<4x2x64xf32>
    %18 = arith.select %14, %17, %9 : vector<4x2x64xi1>, vector<4x2x64xf32>
    %c3_i32_21 = arith.constant 3 : i32
    %19 = vector.broadcast %c3_i32_21 : i32 to vector<4x2x64xi32>
    %20 = arith.cmpi eq, %12, %19 : vector<4x2x64xi32>
    %21 = vector.shape_cast %3 : vector<2x64xf32> to vector<1x2x64xf32>
    %22 = vector.shape_cast %21 : vector<1x2x64xf32> to vector<1x2x64xf32>
    %23 = vector.broadcast %22 : vector<1x2x64xf32> to vector<4x2x64xf32>
    %24 = arith.select %20, %23, %11 : vector<4x2x64xi1>, vector<4x2x64xf32>
    %c0_22 = arith.constant 0 : index
    %c0_23 = arith.constant 0 : index
    %c0_24 = arith.constant 0 : index
    %25 = vector.load %arg1[%c0_22, %c0_23, %c0_24] : memref<1x4x64xf32, #tpu.memory_space<vmem>>, vector<1x4x64xf32>
    %26 = vector.shape_cast %25 : vector<1x4x64xf32> to vector<4x64xf32>
    %27 = vector.extract_strided_slice %26 {offsets = [0, 0], sizes = [2, 64], strides = [1, 1]} : vector<4x64xf32> to vector<2x64xf32>
    %28 = vector.extract_strided_slice %18 {offsets = [0, 0, 0], sizes = [4, 1, 64], strides = [1, 1, 1]} : vector<4x2x64xf32> to vector<4x1x64xf32>
    %29 = vector.shape_cast %28 : vector<4x1x64xf32> to vector<4x64xf32>
    %30 = vector.extract_strided_slice %24 {offsets = [0, 0, 0], sizes = [4, 1, 64], strides = [1, 1, 1]} : vector<4x2x64xf32> to vector<4x1x64xf32>
    %31 = vector.shape_cast %30 : vector<4x1x64xf32> to vector<4x64xf32>
    %cst = arith.constant dense<0.000000e+00> : vector<2x4xf32>
    %32 = tpu.matmul %27, %29, %cst {dimension_numbers = #tpu.dot_dimension_numbers<[1], [1], [0], [0], [0, 0, 1, 0], [], []>} : vector<2x64xf32>, vector<4x64xf32>, vector<2x4xf32> -> vector<2x4xf32>
    %cst_25 = arith.constant 1.250000e-01 : f32
    %33 = vector.broadcast %cst_25 : f32 to vector<2x4xf32>
    %34 = arith.mulf %32, %33 : vector<2x4xf32>
    %cst_26 = arith.constant dense<0xFF800000> : vector<2xf32>
    %35 = vector.multi_reduction <maximumf>, %34, %cst_26 [1] : vector<2x4xf32> to vector<2xf32>
    %36 = vector.shape_cast %35 : vector<2xf32> to vector<2x1xf32>
    %37 = vector.broadcast %36 : vector<2x1xf32> to vector<2x4xf32>
    %38 = arith.subf %34, %37 : vector<2x4xf32>
    %39 = math.exp %38 : vector<2x4xf32>
    %cst_27 = arith.constant dense<0.000000e+00> : vector<2xf32>
    %40 = vector.multi_reduction <add>, %39, %cst_27 [1] : vector<2x4xf32> to vector<2xf32>
    %41 = vector.shape_cast %40 : vector<2xf32> to vector<2x1xf32>
    %42 = vector.broadcast %41 : vector<2x1xf32> to vector<2x4xf32>
    %43 = arith.divf %39, %42 : vector<2x4xf32>
    %cst_28 = arith.constant dense<0.000000e+00> : vector<2x64xf32>
    %44 = tpu.matmul %43, %31, %cst_28 {dimension_numbers = #tpu.dot_dimension_numbers<[1], [0], [0], [1], [0, 0, 1, 1], [], []>} : vector<2x4xf32>, vector<4x64xf32>, vector<2x64xf32> -> vector<2x64xf32>
    %45 = vector.extract_strided_slice %26 {offsets = [2, 0], sizes = [2, 64], strides = [1, 1]} : vector<4x64xf32> to vector<2x64xf32>
    %46 = vector.extract_strided_slice %18 {offsets = [0, 1, 0], sizes = [4, 1, 64], strides = [1, 1, 1]} : vector<4x2x64xf32> to vector<4x1x64xf32>
    %47 = vector.shape_cast %46 : vector<4x1x64xf32> to vector<4x64xf32>
    %48 = vector.extract_strided_slice %24 {offsets = [0, 1, 0], sizes = [4, 1, 64], strides = [1, 1, 1]} : vector<4x2x64xf32> to vector<4x1x64xf32>
    %49 = vector.shape_cast %48 : vector<4x1x64xf32> to vector<4x64xf32>
    %cst_29 = arith.constant dense<0.000000e+00> : vector<2x4xf32>
    %50 = tpu.matmul %45, %47, %cst_29 {dimension_numbers = #tpu.dot_dimension_numbers<[1], [1], [0], [0], [0, 0, 1, 0], [], []>} : vector<2x64xf32>, vector<4x64xf32>, vector<2x4xf32> -> vector<2x4xf32>
    %cst_30 = arith.constant 1.250000e-01 : f32
    %51 = vector.broadcast %cst_30 : f32 to vector<2x4xf32>
    %52 = arith.mulf %50, %51 : vector<2x4xf32>
    %cst_31 = arith.constant dense<0xFF800000> : vector<2xf32>
    %53 = vector.multi_reduction <maximumf>, %52, %cst_31 [1] : vector<2x4xf32> to vector<2xf32>
    %54 = vector.shape_cast %53 : vector<2xf32> to vector<2x1xf32>
    %55 = vector.broadcast %54 : vector<2x1xf32> to vector<2x4xf32>
    %56 = arith.subf %52, %55 : vector<2x4xf32>
    %57 = math.exp %56 : vector<2x4xf32>
    %cst_32 = arith.constant dense<0.000000e+00> : vector<2xf32>
    %58 = vector.multi_reduction <add>, %57, %cst_32 [1] : vector<2x4xf32> to vector<2xf32>
    %59 = vector.shape_cast %58 : vector<2xf32> to vector<2x1xf32>
    %60 = vector.broadcast %59 : vector<2x1xf32> to vector<2x4xf32>
    %61 = arith.divf %57, %60 : vector<2x4xf32>
    %cst_33 = arith.constant dense<0.000000e+00> : vector<2x64xf32>
    %62 = tpu.matmul %61, %49, %cst_33 {dimension_numbers = #tpu.dot_dimension_numbers<[1], [0], [0], [1], [0, 0, 1, 1], [], []>} : vector<2x4xf32>, vector<4x64xf32>, vector<2x64xf32> -> vector<2x64xf32>
    %63 = tpu.concatenate %44, %62 in 0 : vector<2x64xf32>, vector<2x64xf32> -> vector<4x64xf32>
    %64 = vector.shape_cast %63 : vector<4x64xf32> to vector<1x4x64xf32>
    %c0_34 = arith.constant 0 : index
    %c0_35 = arith.constant 0 : index
    %c0_36 = arith.constant 0 : index
    %65 = vector.load %arg6[%c0_34, %c0_35, %c0_36] : memref<1x4x64xf32, #tpu.memory_space<vmem>>, vector<1x4x64xf32>
    tpu.vector_store %arg6[%c0_34, %c0_35, %c0_36], %64 {strides = array<i32>} : memref<1x4x64xf32, #tpu.memory_space<vmem>>, vector<1x4x64xf32>,
    return
  }
  func.func @transform_0(%arg0: i32) -> (i32, i32, i32) {
    %c0_i32 = arith.constant 0 : i32
    %c0_i32_0 = arith.constant 0 : i32
    %c0_i32_1 = arith.constant 0 : i32
    return %arg0, %c0_i32, %c0_i32_0 : i32, i32, i32
  }
  func.func @transform_1(%arg0: i32) -> (i32, i32, i32) {
    %c0_i32 = arith.constant 0 : i32
    %c0_i32_0 = arith.constant 0 : i32
    %c0_i32_1 = arith.constant 0 : i32
    return %arg0, %c0_i32, %c0_i32_0 : i32, i32, i32
  }
  func.func @transform_2(%arg0: i32) -> (i32, i32, i32) {
    %c0_i32 = arith.constant 0 : i32
    %c0_i32_0 = arith.constant 0 : i32
    %c0_i32_1 = arith.constant 0 : i32
    return %arg0, %c0_i32, %c0_i32_0 : i32, i32, i32
  }
  func.func @transform_3(%arg0: i32) -> (i32, i32, i32, i32) {
    %c0_i32 = arith.constant 0 : i32
    %c0_i32_0 = arith.constant 0 : i32
    %c0_i32_1 = arith.constant 0 : i32
    %c0_i32_2 = arith.constant 0 : i32
    return %arg0, %c0_i32, %c0_i32_0, %c0_i32_1 : i32, i32, i32, i32
  }
  func.func @transform_4(%arg0: i32) -> (i32, i32, i32, i32) {
    %c0_i32 = arith.constant 0 : i32
    %c0_i32_0 = arith.constant 0 : i32
    %c0_i32_1 = arith.constant 0 : i32
    %c0_i32_2 = arith.constant 0 : i32
    return %arg0, %c0_i32, %c0_i32_0, %c0_i32_1 : i32, i32, i32, i32
  }
  func.func @transform_5(%arg0: i32) -> (i32, i32, i32) {
    %c0_i32 = arith.constant 0 : i32
    %c0_i32_0 = arith.constant 0 : i32
    %c0_i32_1 = arith.constant 0 : i32
    return %arg0, %c0_i32, %c0_i32_0 : i32, i32, i32
  }
  func.func @transform_6(%arg0: i32) -> (i32, i32, i32, i32) {
    %c3_i32 = arith.constant 3 : i32
    %c0_i32 = arith.constant 0 : i32
    %c0_i32_0 = arith.constant 0 : i32
    %c0_i32_1 = arith.constant 0 : i32
    return %arg0, %c3_i32, %c0_i32, %c0_i32_0 : i32, i32, i32, i32
  }
  func.func @transform_7(%arg0: i32) -> (i32, i32, i32, i32) {
    %c3_i32 = arith.constant 3 : i32
    %c0_i32 = arith.constant 0 : i32
    %c0_i32_0 = arith.constant 0 : i32
    %c0_i32_1 = arith.constant 0 : i32
    return %arg0, %c3_i32, %c0_i32, %c0_i32_0 : i32, i32, i32, i32
  }
}

module attributes {stable_mosaic.version = 11 : i64} {
  func.func @_wo_ffn_kernel(%arg0: i32, %arg1: memref<2x256xf32, #tpu.memory_space<vmem>>, %arg2: memref<2x256xf32, #tpu.memory_space<vmem>>, %arg3: memref<256x256xf32, #tpu.memory_space<vmem>>, %arg4: memref<1x256xf32, #tpu.memory_space<vmem>>, %arg5: memref<256x256xf32, #tpu.memory_space<vmem>>, %arg6: memref<256x256xf32, #tpu.memory_space<vmem>>, %arg7: memref<256x256xf32, #tpu.memory_space<vmem>>, %arg8: memref<2x256xf32, #tpu.memory_space<vmem>>, %arg9: memref<2x256xf32, #tpu.memory_space<vmem>>, %arg10: memref<2x256xf32, #tpu.memory_space<vmem>>, %arg11: memref<2x256xf32, #tpu.memory_space<vmem>>) attributes {dimension_semantics = [#tpu.dimension_semantics<arbitrary>], iteration_bounds = array<i64: 3>, scalar_prefetch = 0 : i64, scratch_operands = 3 : i64, tpu.core_type = #tpu.core_type<tc>, window_params = [{pipeline_mode = #tpu.pipeline_mode<synchronous>, transform_indices = @transform_0, window_bounds = array<i64: 2, 256>}, {pipeline_mode = #tpu.pipeline_mode<synchronous>, transform_indices = @transform_1, window_bounds = array<i64: 2, 256>}, {pipeline_mode = #tpu.pipeline_mode<synchronous>, transform_indices = @transform_2, window_bounds = array<i64: 256, 256>}, {pipeline_mode = #tpu.pipeline_mode<synchronous>, transform_indices = @transform_3, window_bounds = array<i64: 1, 256>}, {transform_indices = @transform_4, window_bounds = array<i64: 256, 256>}, {transform_indices = @transform_5, window_bounds = array<i64: 256, 256>}, {transform_indices = @transform_6, window_bounds = array<i64: 256, 256>}, {pipeline_mode = #tpu.pipeline_mode<synchronous>, transform_indices = @transform_7, window_bounds = array<i64: 2, 256>}]} {
    %c0_i32 = arith.constant 0 : i32
    %0 = arith.cmpi eq, %arg0, %c0_i32 : i32
    %1 = arith.extui %0 : i1 to i32
    %c0_i32_0 = arith.constant 0 : i32
    %2 = arith.cmpi ne, %1, %c0_i32_0 : i32
    scf.if %2 {
      %c0_16 = arith.constant 0 : index
      %c0_17 = arith.constant 0 : index
      %23 = vector.load %arg1[%c0_16, %c0_17] : memref<2x256xf32, #tpu.memory_space<vmem>>, vector<2x256xf32>
      %c0_18 = arith.constant 0 : index
      %c0_19 = arith.constant 0 : index
      %24 = vector.load %arg2[%c0_18, %c0_19] : memref<2x256xf32, #tpu.memory_space<vmem>>, vector<2x256xf32>
      %c0_20 = arith.constant 0 : index
      %c0_21 = arith.constant 0 : index
      %25 = vector.load %arg3[%c0_20, %c0_21] : memref<256x256xf32, #tpu.memory_space<vmem>>, vector<256x256xf32>
      %cst_22 = arith.constant dense<0.000000e+00> : vector<2x256xf32>
      %26 = tpu.matmul %24, %25, %cst_22 {dimension_numbers = #tpu.dot_dimension_numbers<[1], [0], [0], [1], [0, 0, 1, 1], [], []>} : vector<2x256xf32>, vector<256x256xf32>, vector<2x256xf32> -> vector<2x256xf32>
      %27 = arith.addf %23, %26 : vector<2x256xf32>
      %c0_23 = arith.constant 0 : index
      %c0_24 = arith.constant 0 : index
      %28 = vector.load %arg9[%c0_23, %c0_24] : memref<2x256xf32, #tpu.memory_space<vmem>>, vector<2x256xf32>
      tpu.vector_store %arg9[%c0_23, %c0_24], %27 {strides = array<i32>} : memref<2x256xf32, #tpu.memory_space<vmem>>, vector<2x256xf32>,
      %29 = arith.mulf %27, %27 : vector<2x256xf32>
      %cst_25 = arith.constant dense<0.000000e+00> : vector<2xf32>
      %30 = vector.multi_reduction <add>, %29, %cst_25 [1] : vector<2x256xf32> to vector<2xf32>
      %31 = vector.shape_cast %30 : vector<2xf32> to vector<2x1xf32>
      %cst_26 = arith.constant 2.560000e+02 : f32
      %32 = vector.broadcast %cst_26 : f32 to vector<2x1xf32>
      %33 = arith.divf %31, %32 : vector<2x1xf32>
      %cst_27 = arith.constant 9.99999974E-6 : f32
      %34 = vector.broadcast %cst_27 : f32 to vector<2x1xf32>
      %35 = arith.addf %33, %34 : vector<2x1xf32>
      %36 = math.rsqrt %35 : vector<2x1xf32>
      %37 = vector.broadcast %36 : vector<2x1xf32> to vector<2x256xf32>
      %38 = arith.mulf %27, %37 : vector<2x256xf32>
      %c0_28 = arith.constant 0 : index
      %c0_29 = arith.constant 0 : index
      %39 = vector.load %arg4[%c0_28, %c0_29] : memref<1x256xf32, #tpu.memory_space<vmem>>, vector<1x256xf32>
      %40 = vector.broadcast %39 : vector<1x256xf32> to vector<2x256xf32>
      %41 = arith.mulf %38, %40 : vector<2x256xf32>
      %c0_30 = arith.constant 0 : index
      %c0_31 = arith.constant 0 : index
      %42 = vector.load %arg10[%c0_30, %c0_31] : memref<2x256xf32, #tpu.memory_space<vmem>>, vector<2x256xf32>
      tpu.vector_store %arg10[%c0_30, %c0_31], %41 {strides = array<i32>} : memref<2x256xf32, #tpu.memory_space<vmem>>, vector<2x256xf32>,
      %cst_32 = arith.constant 0.000000e+00 : f32
      %43 = vector.broadcast %cst_32 : f32 to vector<2x256xf32>
      %c0_33 = arith.constant 0 : index
      %c0_34 = arith.constant 0 : index
      %44 = vector.load %arg11[%c0_33, %c0_34] : memref<2x256xf32, #tpu.memory_space<vmem>>, vector<2x256xf32>
      tpu.vector_store %arg11[%c0_33, %c0_34], %43 {strides = array<i32>} : memref<2x256xf32, #tpu.memory_space<vmem>>, vector<2x256xf32>,
    } else {
    }
    %c0 = arith.constant 0 : index
    %c0_1 = arith.constant 0 : index
    %3 = vector.load %arg10[%c0, %c0_1] : memref<2x256xf32, #tpu.memory_space<vmem>>, vector<2x256xf32>
    %c0_2 = arith.constant 0 : index
    %c0_3 = arith.constant 0 : index
    %4 = vector.load %arg5[%c0_2, %c0_3] : memref<256x256xf32, #tpu.memory_space<vmem>>, vector<256x256xf32>
    %cst = arith.constant dense<0.000000e+00> : vector<2x256xf32>
    %5 = tpu.matmul %3, %4, %cst {dimension_numbers = #tpu.dot_dimension_numbers<[1], [0], [0], [1], [0, 0, 1, 1], [], []>} : vector<2x256xf32>, vector<256x256xf32>, vector<2x256xf32> -> vector<2x256xf32>
    %6 = arith.negf %5 : vector<2x256xf32>
    %7 = math.exp %6 : vector<2x256xf32>
    %cst_4 = arith.constant 1.000000e+00 : f32
    %8 = vector.broadcast %cst_4 : f32 to vector<2x256xf32>
    %9 = arith.addf %8, %7 : vector<2x256xf32>
    %10 = arith.divf %8, %9 : vector<2x256xf32>
    %11 = arith.mulf %5, %10 : vector<2x256xf32>
    %c0_5 = arith.constant 0 : index
    %c0_6 = arith.constant 0 : index
    %12 = vector.load %arg6[%c0_5, %c0_6] : memref<256x256xf32, #tpu.memory_space<vmem>>, vector<256x256xf32>
    %cst_7 = arith.constant dense<0.000000e+00> : vector<2x256xf32>
    %13 = tpu.matmul %3, %12, %cst_7 {dimension_numbers = #tpu.dot_dimension_numbers<[1], [0], [0], [1], [0, 0, 1, 1], [], []>} : vector<2x256xf32>, vector<256x256xf32>, vector<2x256xf32> -> vector<2x256xf32>
    %14 = arith.mulf %11, %13 : vector<2x256xf32>
    %c0_8 = arith.constant 0 : index
    %c0_9 = arith.constant 0 : index
    %15 = vector.load %arg11[%c0_8, %c0_9] : memref<2x256xf32, #tpu.memory_space<vmem>>, vector<2x256xf32>
    %c0_10 = arith.constant 0 : index
    %c0_11 = arith.constant 0 : index
    %16 = vector.load %arg7[%c0_10, %c0_11] : memref<256x256xf32, #tpu.memory_space<vmem>>, vector<256x256xf32>
    %cst_12 = arith.constant dense<0.000000e+00> : vector<2x256xf32>
    %17 = tpu.matmul %14, %16, %cst_12 {dimension_numbers = #tpu.dot_dimension_numbers<[1], [0], [0], [1], [0, 0, 1, 1], [], []>} : vector<2x256xf32>, vector<256x256xf32>, vector<2x256xf32> -> vector<2x256xf32>
    %18 = arith.addf %15, %17 : vector<2x256xf32>
    %c0_13 = arith.constant 0 : index
    %c0_14 = arith.constant 0 : index
    %19 = vector.load %arg11[%c0_13, %c0_14] : memref<2x256xf32, #tpu.memory_space<vmem>>, vector<2x256xf32>
    tpu.vector_store %arg11[%c0_13, %c0_14], %18 {strides = array<i32>} : memref<2x256xf32, #tpu.memory_space<vmem>>, vector<2x256xf32>,
    %c2_i32 = arith.constant 2 : i32
    %20 = arith.cmpi eq, %arg0, %c2_i32 : i32
    %21 = arith.extui %20 : i1 to i32
    %c0_i32_15 = arith.constant 0 : i32
    %22 = arith.cmpi ne, %21, %c0_i32_15 : i32
    scf.if %22 {
      %c0_16 = arith.constant 0 : index
      %c0_17 = arith.constant 0 : index
      %23 = vector.load %arg9[%c0_16, %c0_17] : memref<2x256xf32, #tpu.memory_space<vmem>>, vector<2x256xf32>
      %c0_18 = arith.constant 0 : index
      %c0_19 = arith.constant 0 : index
      %24 = vector.load %arg11[%c0_18, %c0_19] : memref<2x256xf32, #tpu.memory_space<vmem>>, vector<2x256xf32>
      %25 = arith.addf %23, %24 : vector<2x256xf32>
      %c0_20 = arith.constant 0 : index
      %c0_21 = arith.constant 0 : index
      %26 = vector.load %arg8[%c0_20, %c0_21] : memref<2x256xf32, #tpu.memory_space<vmem>>, vector<2x256xf32>
      tpu.vector_store %arg8[%c0_20, %c0_21], %25 {strides = array<i32>} : memref<2x256xf32, #tpu.memory_space<vmem>>, vector<2x256xf32>,
    } else {
    }
    return
  }
  func.func @transform_0(%arg0: i32) -> (i32, i32) {
    %c0_i32 = arith.constant 0 : i32
    %c0_i32_0 = arith.constant 0 : i32
    %c0_i32_1 = arith.constant 0 : i32
    return %c0_i32, %c0_i32_0 : i32, i32
  }
  func.func @transform_1(%arg0: i32) -> (i32, i32) {
    %c0_i32 = arith.constant 0 : i32
    %c0_i32_0 = arith.constant 0 : i32
    %c0_i32_1 = arith.constant 0 : i32
    return %c0_i32, %c0_i32_0 : i32, i32
  }
  func.func @transform_2(%arg0: i32) -> (i32, i32) {
    %c0_i32 = arith.constant 0 : i32
    %c0_i32_0 = arith.constant 0 : i32
    %c0_i32_1 = arith.constant 0 : i32
    return %c0_i32, %c0_i32_0 : i32, i32
  }
  func.func @transform_3(%arg0: i32) -> (i32, i32) {
    %c0_i32 = arith.constant 0 : i32
    %c0_i32_0 = arith.constant 0 : i32
    %c0_i32_1 = arith.constant 0 : i32
    return %c0_i32, %c0_i32_0 : i32, i32
  }
  func.func @transform_4(%arg0: i32) -> (i32, i32) {
    %c0_i32 = arith.constant 0 : i32
    %c0_i32_0 = arith.constant 0 : i32
    return %c0_i32, %arg0 : i32, i32
  }
  func.func @transform_5(%arg0: i32) -> (i32, i32) {
    %c0_i32 = arith.constant 0 : i32
    %c0_i32_0 = arith.constant 0 : i32
    return %c0_i32, %arg0 : i32, i32
  }
  func.func @transform_6(%arg0: i32) -> (i32, i32) {
    %c0_i32 = arith.constant 0 : i32
    %c0_i32_0 = arith.constant 0 : i32
    return %arg0, %c0_i32 : i32, i32
  }
  func.func @transform_7(%arg0: i32) -> (i32, i32) {
    %c0_i32 = arith.constant 0 : i32
    %c0_i32_0 = arith.constant 0 : i32
    %c0_i32_1 = arith.constant 0 : i32
    return %c0_i32, %c0_i32_0 : i32, i32
  }
}

</mosaic_0001>

<bundles_post_ra>
// kernel: fwd.3
= control target key start
LH: loop header
LB: loop body
LE: loop exit
PB: predicated region body
PF: predicated region fallthrough
CT: control target
= control target key end

     0   :  { %8 = vsyncpa [#allocation3], 0  ;;  %s883_s0 = inlined_call_operand.vmem [shape: f32[2,256], index: 0, kind: input, shape index: {}]   ;;  %s884_s1 = inlined_call_operand.vmem [shape: f32[1,256], index: 1, kind: input, shape index: {}]   ;;  %s885_s2 = inlined_call_operand.hbm [shape: f32[256,512], index: 2, kind: input, shape index: {}]   ;;  %s886_s3 = inlined_call_operand.vmem [shape: f32[2,512], index: 3, kind: output, shape index: {}]  }
   0x1   :  { %10 = vsyncpa [#allocation3 + $0x1], 0  ;;  %s688_s12 = smov 0   ;;  %s690_s13 = smov 0  }
   0x2   :  { %s692_s14 = smov 0   ;;  %s694_s15 = smov 0  }
   0x3 LB: > { %s471_s16 = sadd.s32 4294967295, %s660_s15   ;;  %s708_s17 = sadd.s32 1, %s660_s15   ;;  %s660_s15 = sphi %s694_s15, %s892_s15   ;;  %s656_s14 = sphi %s692_s14, %s891_s14   ;;  %s652_s13 = sphi %s690_s13, %s890_s13   ;;  %s648_s12 = sphi %s688_s12, %s889_s12  }
   0x4   : > { %s62_s18 = ssub.s32 %s660_s15, %s708_s17  ;;  %s65_s19 = sadd.s32 1, %s656_s14 }
   0x5   : > { %p63_p0 = scmp.eq.s32.totalorder %s62_s18, 0  ;;  %p72_p1 = scmp.ne.s32.totalorder %s656_s14, %s652_s13 }
   0x6   : > { %p73_p2 = scmp.eq.s32.totalorder %s660_s15, 0  ;;  %p78_p3 = scmp.ne.s32.totalorder %s652_s13, %s648_s12 }
   0x7   : > { %s718_s20 = scalar_select %p63_p0, %s656_s14, %s65_s19  }
   0x8   : > { %p74_p4 = por %p73_p2, %p72_p1  ;;  %p79_p5 = scmp.eq.s32.totalorder %s471_s16, 0 }
   0x9   : > { %p556_p6 = scmp.lt.s32.totalorder %s660_s15, 2  ;;  %s134_s22 = sand.u32 1, %s656_s14  }
   0xa   : > { %p723_p7 = por %p79_p5, %p78_p3  ;;  %s475_s23 = sshll.u32 %s134_s22, 9 }
   0xb   : > { %s485_s24 = sshll.u32 %s660_s15, 8  ;;  %s138_s28 = scalar_lea.vmem [#allocation2], %s475_s23 }
   0xc   : > { %s732_s27 = scalar_lea.hbm %s885_s2, %s485_s24  ;;  %s145_s29 = sshll.u32 %s138_s28, 4  ;;  %s734_s29 = int_to_ptr.vmem [resolvable:$true] %s145_s29 }
   0xd   : > { %p736_p8 = pnand %p556_p6, %p74_p4  ;;  %s740_s4 = scalar_lea.sflag [#allocation3], %s134_s22 }
   0xe   : > { %s596_s5 = scalar_lea.hbm %s732_s27, 8192  ;;  %s601_s8 = scalar_lea.hbm %s885_s2, 16384 }
   0xf   : > { %p597_p9 = scmp.ne.s32.totalorder %s732_s27, %s596_s5  ;;  %p598_p10 = pneg %p736_p8 }
  0x10   : > { %p602_p13 = scmp.lt.u32.totalorder %s732_s27, %s885_s2  ;;  %p603_p0 = scmp.lt.u32.totalorder %s601_s8, %s596_s5 }
  0x11   : > { %p599_p11 = pnand %p598_p10, %p597_p9  ;;  %p605_p2 = scmp.lt.u32.totalorder %s596_s5, %s732_s27 }
  0x12   : > { %p604_p1 = por %p603_p0, %p602_p13 }
  0x13   : > { %p600_p12 = pneg %p599_p11 }
  0x14   : > { %p606_p3 = por %p605_p2, %p604_p1 }
  0x16   : > { %p607_p4 = pnand %p606_p3, %p600_p12 }
  0x18   : > { %610 = shalt.err (!%p607_p4)
}
  0x19   : > { %s611_s11 = scalar_lea.vmem %s734_s29, 8192  ;;  %s662_s12 = smov [#allocation2]  }
  0x1a   : > { %p612_p5 = scmp.ne.s32.totalorder %s734_s29, %s611_s11  ;;  %s616_s18 = sshll.u32 %s662_s12, 4  ;;  %s617_s18 = int_to_ptr.vmem [resolvable:$false] %s616_s18 }
  0x1b   : > { %s618_s19 = scalar_lea.vmem %s617_s18, 16384  ;;  %p619_p11 = scmp.lt.s32.totalorder %s734_s29, %s617_s18 }
  0x1c   : > { %p614_p6 = pnand %p612_p5, %p598_p10  ;;  %p620_p13 = scmp.lt.s32.totalorder %s618_s19, %s611_s11 }
  0x1e   : > { %p615_p9 = pneg %p614_p6  ;;  %p621_p0 = por %p620_p13, %p619_p11 }
  0x20   : > { %p622_p1 = pnand %p621_p0, %p615_p9 }
  0x22   : > { %625 = shalt.err (!%p622_p1)
}
  0x23   : > { %s663_s22 = smov 512   ;;  %s664_s23 = smov 256  }
  0x24   : > { %s665_s24 = smov 16   ;;  %p478_p10 = scmp.ge.s32.totalorder %s660_s15, 1 }
  0x25   : > { %555 = dma.hbm_to_vmem [thread:$0]  (!%p736_p8), %s732_s27, 8192, %s734_s29, %s740_s4, %s663_s22, %s664_s23, %s665_s24  }
  0x26   : > { %p153_p12 = scmp.lt.s32.totalorder %s660_s15, 3 }
  0x28   : > { %p154_p2 = pnand %p478_p10, %p153_p12 }
  0x29   : > { %s159_s25 = sand.u32 (!%p154_p2), 1, %s652_s13  }
  0x2a   : > { %157 = sbr.rel (%p154_p2) target bundleno = 448 (0x1c0), region = 32  ;;  %s479_s26 = sshll.u32 (!%p154_p2), %s159_s25, 9 }
  0x2b   : > { %s160_s28 = scalar_lea.sflag (!%p154_p2), [#allocation3], %s159_s25  ;;  %s771_s5 = scalar_lea.vmem (!%p154_p2), [#allocation2], %s479_s26 }
  0x31   : > { %643 = dma.done.wait (%p723_p7), %s160_s28, 8192  }
  0x32   : > { %645 = vsyncadd (%p723_p7), %s160_s28, 4294959104  ;;  %v199_v0 = vlaneseq  ;;  %v666_v1 = vmov 1983009808   ;;  %v785_v6 = vld [vmem:[%s883_s0] sm:$0xf]  ;;  %v247_v7 = vld [vmem:[%s771_s5 + $0x8] sm:$0xff] }
  0x33   : > { %v197_v2 = vunpack.c.l.s4 %v666_v1  ;;  %v249_v8 = vld [vmem:[%s771_s5 + $0x18] sm:$0xff]  ;;  %v194_v9 = vmul.f32 %v785_v6, %v785_v6  ;;  %v246_v11 = vld [vmem:[%s771_s5] sm:$0xff]  ;;  %v248_v12 = vld [vmem:[%s771_s5 + $0x10] sm:$0xff]  ;;  %vm206_vm0 = vcmask 1041408   ;;  %s480_s4 = sshll.u32 %s471_s16, 1 }
  0x34   : > { %v777_v3 = vshrl.u32 %v199_v0, 7  ;;  %v486_v10 = vpack.c.bf16 %v249_v8, %v247_v7  ;;  %v251_v13 = vld [vmem:[%s771_s5 + $0x28] sm:$0xff]  ;;  %v488_v14 = vpack.c.bf16 %v248_v12, %v246_v11  ;;  %v253_v15 = vld [vmem:[%s771_s5 + $0x38] sm:$0xff]  ;;  %v250_v16 = vld [vmem:[%s771_s5 + $0x20] sm:$0xff]  ;;  %p188_p7 = scmp.lt.s32.totalorder %s480_s4, 3 }
  0x35   : > { %v198_v4 = vunpack.c.0.s8 %v197_v2  ;;  %v252_v17 = vld [vmem:[%s771_s5 + $0x30] sm:$0xff]  ;;  %v490_v19 = vpack.c.bf16 %v253_v15, %v251_v13  ;;  %v255_v20 = vld [vmem:[%s771_s5 + $0x48] sm:$0xff]  ;;  %v257_v21 = vld [vmem:[%s771_s5 + $0x58] sm:$0xff] }
  0x36   : > { %487 = vmatprep.subr.bf16.mxu0 %v486_v10  ;;  %v492_v22 = vpack.c.bf16 %v252_v17, %v250_v16  ;;  %v494_v25 = vpack.c.bf16 %v257_v21, %v255_v20  ;;  %v254_v26 = vld [vmem:[%s771_s5 + $0x40] sm:$0xff]  ;;  %v256_v27 = vld [vmem:[%s771_s5 + $0x50] sm:$0xff]  ;;  %v259_v28 = vld [vmem:[%s771_s5 + $0x68] sm:$0xff]  ;;  %s894_s4 = smov (!%p188_p7, %s480_s4), 3 }
  0x37   : > { %v780_v5 = vsub.s32 %v198_v4, %v777_v3  ;;  %489 = vmatpush1.bf16.msra.mxu0 %v488_v14  ;;  %v261_v29 = vld [vmem:[%s771_s5 + $0x78] sm:$0xff]  ;;  %v496_v32 = vpack.c.bf16 %v256_v27, %v254_v26  ;;  %v258_v34 = vld [vmem:[%s771_s5 + $0x60] sm:$0xff]  ;;  %v260_v35 = vld [vmem:[%s771_s5 + $0x70] sm:$0xff]  ;;  %s481_s6 = sshll.u32 %s894_s4, 1 }
  0x38   : > { %491 = vmatprep.subr.bf16.mxu0 %v490_v19  ;;  %v498_v33 = vpack.c.bf16 %v261_v29, %v259_v28  ;;  %v263_v36 = vld [vmem:[%s771_s5 + $0x88] sm:$0xff]  ;;  %v265_v37 = vld [vmem:[%s771_s5 + $0x98] sm:$0xff]  ;;  %v500_v38 = vpack.c.bf16 %v260_v35, %v258_v34  ;;  %v262_v40 = vld [vmem:[%s771_s5 + $0x80] sm:$0xff]  ;;  %s191_s9 = scalar_lea.vmem %s886_s3, %s481_s6 }
  0x39   : > { %v202_v18 = vrot.slane %v194_v9, %v780_v5  ;;  %v502_v39 = vpack.c.bf16 %v265_v37, %v263_v36  ;;  %v264_v41 = vld [vmem:[%s771_s5 + $0x90] sm:$0xff]  ;;  %v267_v42 = vld [vmem:[%s771_s5 + $0xa8] sm:$0xff]  ;;  %v269_v43 = vld [vmem:[%s771_s5 + $0xb8] sm:$0xff] }
  0x3a   : > { %v504_v44 = vpack.c.bf16 %v264_v41, %v262_v40  ;;  %v506_v45 = vpack.c.bf16 %v269_v43, %v267_v42  ;;  %v266_v46 = vld [vmem:[%s771_s5 + $0xa0] sm:$0xff]  ;;  %v268_v47 = vld [vmem:[%s771_s5 + $0xb0] sm:$0xff]  ;;  %v271_v48 = vld [vmem:[%s771_s5 + $0xc8] sm:$0xff] }
  0x3b   : > { %v203_v23 = vcombine.high %v202_v18, %v202_v18  ;;  %v207_v24 = vsel %vm206_vm0, %v202_v18, 0.0  ;;  %493 = vmatpush1.bf16.msra.mxu0 %v492_v22  ;;  %v273_v49 = vld [vmem:[%s771_s5 + $0xd8] sm:$0xff]  ;;  %v508_v50 = vpack.c.bf16 %v268_v47, %v266_v46  ;;  %v270_v52 = vld [vmem:[%s771_s5 + $0xc0] sm:$0xff]  ;;  %v272_v53 = vld [vmem:[%s771_s5 + $0xd0] sm:$0xff] }
  0x3c   : > { %495 = vmatprep.subr.bf16.mxu0 %v494_v25  ;;  %v510_v51 = vpack.c.bf16 %v273_v49, %v271_v48  ;;  %v275_v54 = vld [vmem:[%s771_s5 + $0xe8] sm:$0xff]  ;;  %v277_v55 = vld [vmem:[%s771_s5 + $0xf8] sm:$0xff]  ;;  %v512_v56 = vpack.c.bf16 %v272_v53, %v270_v52  ;;  %v274_v58 = vld [vmem:[%s771_s5 + $0xe0] sm:$0xff]  ;;  %v230_v53 = vsub.s32 0, %v777_v3 }
  0x3d   : > { %v208_v30 = vsel %vm206_vm0, %v203_v23, 0.0  ;;  %v514_v57 = vpack.c.bf16 %v277_v55, %v275_v54  ;;  %v276_v59 = vld [vmem:[%s771_s5 + $0xf0] sm:$0xff]  ;;  %v279_v60 = vld [vmem:[%s771_s5 + $0x108] sm:$0xff]  ;;  %v281_v61 = vld [vmem:[%s771_s5 + $0x118] sm:$0xff]  ;;  %v234_v54 = vsub.s32 1, %v777_v3 }
  0x3e   : > { %v209_v31 = vadd.f32 %v208_v30, %v207_v24  ;;  %v516_v62 = vpack.c.bf16 %v276_v59, %v274_v58  ;;  %v518_v63 = vpack.c.bf16 %v281_v61, %v279_v60  ;;  %v278_v0 = vld [vmem:[%s771_s5 + $0x100] sm:$0xff]  ;;  %v280_v1 = vld [vmem:[%s771_s5 + $0x110] sm:$0xff]  ;;  %v283_v2 = vld [vmem:[%s771_s5 + $0x128] sm:$0xff] }
  0x3f   : > { %497 = vmatpush1.bf16.msra.mxu0 %v496_v32  ;;  %v285_v4 = vld [vmem:[%s771_s5 + $0x138] sm:$0xff]  ;;  %v520_v7 = vpack.c.bf16 %v280_v1, %v278_v0  ;;  %v282_v9 = vld [vmem:[%s771_s5 + $0x120] sm:$0xff]  ;;  %v284_v10 = vld [vmem:[%s771_s5 + $0x130] sm:$0xff] }
  0x40   : > { %210 = vadd.xlane.f32.xlu0 %v209_v31  ;;  %499 = vmatprep.subr.bf16.mxu0 %v498_v33  ;;  %v522_v8 = vpack.c.bf16 %v285_v4, %v283_v2  ;;  %v287_v11 = vld [vmem:[%s771_s5 + $0x148] sm:$0xff]  ;;  %v289_v12 = vld [vmem:[%s771_s5 + $0x158] sm:$0xff]  ;;  %v524_v13 = vpack.c.bf16 %v284_v10, %v282_v9  ;;  %v286_v15 = vld [vmem:[%s771_s5 + $0x140] sm:$0xff] }
  0x41   : > { %v526_v14 = vpack.c.bf16 %v289_v12, %v287_v11  ;;  %v288_v16 = vld [vmem:[%s771_s5 + $0x150] sm:$0xff]  ;;  %v291_v17 = vld [vmem:[%s771_s5 + $0x168] sm:$0xff]  ;;  %v293_v18 = vld [vmem:[%s771_s5 + $0x178] sm:$0xff] }
  0x42   : > { %v528_v19 = vpack.c.bf16 %v288_v16, %v286_v15  ;;  %v530_v20 = vpack.c.bf16 %v293_v18, %v291_v17  ;;  %v290_v21 = vld [vmem:[%s771_s5 + $0x160] sm:$0xff]  ;;  %v292_v22 = vld [vmem:[%s771_s5 + $0x170] sm:$0xff]  ;;  %v295_v23 = vld [vmem:[%s771_s5 + $0x188] sm:$0xff] }
  0x43   : > { %501 = vmatpush1.bf16.msra.mxu0 %v500_v38  ;;  %v297_v24 = vld [vmem:[%s771_s5 + $0x198] sm:$0xff]  ;;  %v532_v25 = vpack.c.bf16 %v292_v22, %v290_v21  ;;  %v294_v27 = vld [vmem:[%s771_s5 + $0x180] sm:$0xff]  ;;  %v296_v28 = vld [vmem:[%s771_s5 + $0x190] sm:$0xff] }
  0x44   : > { %503 = vmatprep.subr.bf16.mxu0 %v502_v39  ;;  %v534_v26 = vpack.c.bf16 %v297_v24, %v295_v23  ;;  %v299_v29 = vld [vmem:[%s771_s5 + $0x1a8] sm:$0xff]  ;;  %v301_v30 = vld [vmem:[%s771_s5 + $0x1b8] sm:$0xff]  ;;  %v536_v31 = vpack.c.bf16 %v296_v28, %v294_v27  ;;  %v298_v33 = vld [vmem:[%s771_s5 + $0x1a0] sm:$0xff] }
  0x45   : > { %v538_v32 = vpack.c.bf16 %v301_v30, %v299_v29  ;;  %v300_v34 = vld [vmem:[%s771_s5 + $0x1b0] sm:$0xff]  ;;  %v303_v35 = vld [vmem:[%s771_s5 + $0x1c8] sm:$0xff]  ;;  %v305_v36 = vld [vmem:[%s771_s5 + $0x1d8] sm:$0xff] }
  0x46   : > { %v540_v37 = vpack.c.bf16 %v300_v34, %v298_v33  ;;  %v542_v38 = vpack.c.bf16 %v305_v36, %v303_v35  ;;  %v302_v39 = vld [vmem:[%s771_s5 + $0x1c0] sm:$0xff]  ;;  %v304_v40 = vld [vmem:[%s771_s5 + $0x1d0] sm:$0xff]  ;;  %v307_v41 = vld [vmem:[%s771_s5 + $0x1e8] sm:$0xff] }
  0x47   : > { %505 = vmatpush1.bf16.msra.mxu0 %v504_v44  ;;  %v309_v42 = vld [vmem:[%s771_s5 + $0x1f8] sm:$0xff]  ;;  %v544_v43 = vpack.c.bf16 %v304_v40, %v302_v39  ;;  %v308_v46 = vld [vmem:[%s771_s5 + $0x1f0] sm:$0xff]  ;;  %v226_v55 = vld [vmem:[%s884_s1] sm:$0x3] }
  0x48   : > { %507 = vmatprep.subr.bf16.mxu0 %v506_v45  ;;  %v546_v44 = vpack.c.bf16 %v309_v42, %v307_v41  ;;  %v306_v45 = vld [vmem:[%s771_s5 + $0x1e0] sm:$0xff]  ;;  %v235_v58 = vrot.slane %v226_v55, %v234_v54 }
  0x49   : > { %v548_v47 = vpack.c.bf16 %v308_v46, %v306_v45 }
  0x4b   : > { %509 = vmatpush1.bf16.msra.mxu0 %v508_v50 }
  0x4c   : > { %511 = vmatprep.subr.bf16.mxu0 %v510_v51  ;;  %v667_v51 = vmov 269488144  }
  0x4d   : > { %v218_v52 = vunpack.c.l.s4 %v667_v51 }
  0x4f   : > { %513 = vmatpush1.bf16.msra.mxu0 %v512_v56  ;;  %v219_v56 = vunpack.c.0.s8 %v218_v52 }
  0x50   : > { %515 = vmatprep.subr.bf16.mxu0 %v514_v57  ;;  %v231_v57 = vrot.slane %v226_v55, %v230_v53 }
  0x51   : > { %v222_v59 = vsub.s32 %v219_v56, %v777_v3 }
  0x52   : > { %v236_v60 = vcombine.low %v231_v57, %v235_v58 }
  0x53   : > { %517 = vmatpush1.bf16.msra.mxu0 %v516_v62 }
  0x54   : > { %519 = vmatprep.subr.bf16.mxu0 %v518_v63  ;;  %v243_v63 = vrot.slane %v236_v60, %v780_v5 }
  0x57   : > { %521 = vmatpush1.bf16.msra.mxu0 %v520_v7 }
  0x58   : > { %523 = vmatprep.subr.bf16.mxu0 %v522_v8 }
  0x5b   : > { %525 = vmatpush1.bf16.msra.mxu0 %v524_v13 }
  0x5c   : > { %527 = vmatprep.subr.bf16.mxu0 %v526_v14 }
  0x5f   : > { %529 = vmatpush1.bf16.msra.mxu0 %v528_v19 }
  0x60   : > { %531 = vmatprep.subr.bf16.mxu0 %v530_v20 }
  0x63   : > { %533 = vmatpush1.bf16.msra.mxu0 %v532_v25 }
  0x64   : > { %535 = vmatprep.subr.bf16.mxu0 %v534_v26 }
  0x67   : > { %537 = vmatpush1.bf16.msra.mxu0 %v536_v31 }
  0x68   : > { %539 = vmatprep.subr.bf16.mxu0 %v538_v32 }
  0x6b   : > { %541 = vmatpush1.bf16.msra.mxu0 %v540_v37 }
  0x6c   : > { %543 = vmatprep.subr.bf16.mxu0 %v542_v38 }
  0x6f   : > { %545 = vmatpush1.bf16.msra.mxu0 %v544_v43 }
  0x70   : > { %547 = vmatprep.subr.bf16.mxu0 %v546_v44 }
  0x73   : > { %549 = vmatpush1.bf16.msra.mxu0 %v548_v47 }
  0xcd   : > { %v211_v48 = vpop.xlane.xlu0 %210 }
  0xce   : > { %v213_v49 = vmul.f32 0.00390625, %v211_v48 }
  0xd0   : > { %v214_v50 = vadd.f32 1e-05, %v213_v49 }
  0xd2   : > { %594 = vrsqrt.f32 %v214_v50 }
  0xdc   : > { %v595_v61 = vpop.eup %594 }
  0xdd   : > { %v223_v62 = vrot.slane %v595_v61, %v222_v59 }
  0xdf   : > { %v225_v0 = vmul.f32 %v223_v62, %v785_v6 }
  0xe1   : > { %v245_v1 = vmul.f32 %v243_v63, %v225_v0 }
  0xe3   : > { %v317_v2 = vrot.slane %v245_v1, %v780_v5 }
  0xe5   : > { %v318_v4 = vcombine.high %v317_v2, %v317_v2 }
  0xe7   : > { %385 = vmatprep.mubr.f32.mxu0 %v318_v4 }
  0xe8   : > { %386 = vmatmul.mubr.f32.vlgmr.msra.gmra.mrb[0].mxu0 %v317_v2 }
 0x1bb   : > { %v387_v7 = vpop.f32.mrb[0].mxu0 }
 0x1bc   : > { %v389_v3 = vpop.f32.mrb[1].mxu0 }
 0x1bd   : > { %v394_v8 = vcombine.low %v387_v7, %v389_v3 }
 0x1bf   : > { %482 = vst.sshfl [vmem:[%s191_s9] sm:$0x33 pattern:$0x76325410] %v394_v8 }
 0x1c0 PF: > { %p13_p8 = scmp.ge.s32.totalorder %s708_s17, 4   ;;  %s889_s12 = smov %s652_s13 }
 0x1c1   : > { %s890_s13 = smov %s656_s14  ;;  %s891_s14 = smov %s718_s20 }
 0x1c2   : > { %s892_s15 = smov %s708_s17  ;;  %15 = sbr.rel (!%p13_p8) target bundleno = 3 (0x3), region = 72 }
 0x1c9   :  { %426 = vsyncpa [#allocation3], 1 }
 0x1ca   :  { %428 = vsyncpa [#allocation3 + $0x1], 1 }

// kernel: fwd.4
= control target key start
LH: loop header
LB: loop body
LE: loop exit
PB: predicated region body
PF: predicated region fallthrough
CT: control target
= control target key end

     0   :  { %s1495_s0 = inlined_call_operand.vmem [shape: f32[2,4,64], index: 0, kind: input, shape index: {}]   ;;  %s1496_s1 = inlined_call_operand.vmem [shape: f32[2,2,64], index: 1, kind: input, shape index: {}]   ;;  %s1497_s2 = inlined_call_operand.vmem [shape: f32[2,2,64], index: 2, kind: input, shape index: {}]   ;;  %s1498_s3 = inlined_call_operand.vmem [shape: f32[4,16,2,64], index: 3, kind: input, shape index: {}, may-alias: {3,6}]   ;;  %s1499_s4 = inlined_call_operand.hbm [shape: f32[4,16,2,64], index: 4, kind: input, shape index: {}, may-alias: {4,7}]   ;;  %s1500_s5 = inlined_call_operand.vmem [shape: f32[2,4,64], index: 5, kind: output, shape index: {0}]   ;;  %s1501_s6 = inlined_call_operand.vmem [shape: f32[4,16,2,64], index: 6, kind: output, shape index: {1}, may-alias: {3,6}]   ;;  %s1502_s7 = inlined_call_operand.hbm [shape: f32[4,16,2,64], index: 7, kind: output, shape index: {2}, may-alias: {4,7}]  }
   0x1   :  { %1504 = sst [smem:[#allocation9_spill]] %s1499_s4 }
   0x2   :  { %13 = vsyncpa [#allocation3], 0 }
   0x3   :  { %15 = vsyncpa [#allocation3 + $0x1], 0 }
   0x4   :  { %16 = vsyncpa [#allocation4], 0 }
   0x5   :  { %18 = vsyncpa [#allocation4 + $0x1], 0  ;;  %s1261_s24 = smov 0   ;;  %s1263_s25 = smov 0  }
   0x6   :  { %s1265_s26 = smov 0   ;;  %s1267_s27 = smov 0  }
   0x7 LB: > { %s1282_s28 = sadd.s32 4294967295, %s1213_s27   ;;  %s995_s29 = sadd.s32 4294967294, %s1213_s27   ;;  %s1213_s27 = sphi %s1267_s27, %s1519_s27   ;;  %s1209_s26 = sphi %s1265_s26, %s1518_s26   ;;  %s1205_s25 = sphi %s1263_s25, %s1517_s25   ;;  %s1201_s24 = sphi %s1261_s24, %s1516_s24  }
   0x8   : > { %s1286_s30 = sadd.s32 1, %s1213_s27   ;;  %s135_s8 = sadd.s32 1, %s1209_s26 }
   0x9   : > { %s132_s9 = ssub.s32 %s1213_s27, %s1286_s30  ;;  %p142_p0 = scmp.ne.s32.totalorder %s1209_s26, %s1205_s25 }
   0xa   : > { %p133_p1 = scmp.eq.s32.totalorder %s132_s9, 0  ;;  %p143_p2 = scmp.eq.s32.totalorder %s1213_s27, 0 }
   0xb   : > { %p148_p3 = scmp.ne.s32.totalorder %s1205_s25, %s1201_s24  ;;  %p149_p4 = scmp.eq.s32.totalorder %s1282_s28, 0 }
   0xc   : > { %s1298_s10 = scalar_select %p133_p1, %s1209_s26, %s135_s8  }
   0xd   : > { %p1300_p5 = por %p143_p2, %p142_p0  ;;  %p1304_p6 = por %p149_p4, %p148_p3 }
   0xe   : > { %1505 = sst [smem:[#allocation8_spill]] %s1298_s10  ;;  %p224_p7 = scmp.eq.s32.totalorder %s1282_s28, 1 }
   0xf   : > { %p230_p8 = scmp.eq.s32.totalorder %s995_s29, 1  ;;  %p1070_p10 = scmp.lt.s32.totalorder %s1213_s27, 2 }
  0x10   : > { %p1311_p11 = por %p224_p7, %p142_p0  ;;  %s279_s15 = sand.u32 1, %s1209_s26  }
  0x11   : > { %p1315_p12 = por %p230_p8, %p148_p3  ;;  %s1026_s16 = sshll.u32 %s1213_s27, 9 }
  0x12   : > { %s1508_s13 = scalar_select %p1311_p11, 1, 0 }
  0x13   : > { %s1509_s14 = scalar_select %p1315_p12, 1, 0 }
  0x14   : > { %s998_s17 = sshll.u32 %s279_s15, 3  ;;  %s1510_s4 = sld [smem:[#allocation9_spill]] }
  0x15   : > { %s283_s21 = scalar_lea.vmem [#allocation2], %s998_s17  ;;  %p1328_p13 = pnand %p1070_p10, %p1300_p5 }
  0x16   : > { %s290_s22 = sshll.u32 %s283_s21, 4  ;;  %s1334_s29 = scalar_lea.sflag [#allocation3], %s279_s15  ;;  %s1332_s22 = int_to_ptr.vmem [resolvable:$true] %s290_s22 }
  0x17   : > { %p1118_p1 = pneg %p1328_p13 }
  0x1a   : > { %s1324_s20 = scalar_lea.hbm %s1510_s4, %s1026_s16  ;;  %s1121_s16 = scalar_lea.hbm %s1510_s4, 2048 }
  0x1b   : > { %s1116_s8 = scalar_lea.hbm %s1324_s20, 128  ;;  %p1122_p4 = scmp.lt.u32.totalorder %s1324_s20, %s1510_s4 }
  0x1c   : > { %p1117_p0 = scmp.ne.s32.totalorder %s1324_s20, %s1116_s8  ;;  %p1123_p5 = scmp.lt.u32.totalorder %s1121_s16, %s1116_s8 }
  0x1d   : > { %p1125_p8 = scmp.lt.u32.totalorder %s1116_s8, %s1324_s20 }
  0x1e   : > { %p1119_p2 = pnand %p1118_p1, %p1117_p0  ;;  %p1124_p7 = por %p1123_p5, %p1122_p4 }
  0x20   : > { %p1120_p3 = pneg %p1119_p2  ;;  %p1126_p10 = por %p1125_p8, %p1124_p7 }
  0x22   : > { %p1127_p9 = pnand %p1126_p10, %p1120_p3 }
  0x24   : > { %1130 = shalt.err (!%p1127_p9)
}
  0x25   : > { %s1131_s15 = scalar_lea.vmem %s1332_s22, 128  ;;  %s1215_s19 = smov [#allocation2]  }
  0x26   : > { %p1132_p0 = scmp.ne.s32.totalorder %s1332_s22, %s1131_s15  ;;  %s1136_s21 = sshll.u32 %s1215_s19, 4  ;;  %s1137_s21 = int_to_ptr.vmem [resolvable:$false] %s1136_s21 }
  0x27   : > { %s1138_s9 = scalar_lea.vmem %s1137_s21, 256  ;;  %p1139_p11 = scmp.lt.s32.totalorder %s1332_s22, %s1137_s21 }
  0x28   : > { %p1134_p2 = pnand %p1132_p0, %p1118_p1  ;;  %p1140_p4 = scmp.lt.s32.totalorder %s1138_s9, %s1131_s15 }
  0x2a   : > { %p1135_p12 = pneg %p1134_p2  ;;  %p1141_p5 = por %p1140_p4, %p1139_p11 }
  0x2c   : > { %p1142_p7 = pnand %p1141_p5, %p1135_p12 }
  0x2e   : > { %1145 = shalt.err (!%p1142_p7)
}
  0x2f   : > { %s1216_s8 = smov 32   ;;  %s1217_s11 = smov 2  }
  0x30   : > { %1065 = dma.hbm_to_vmem [thread:$0]  (!%p1328_p13), %s1324_s20, 128, %s1332_s22, %s1334_s29, %s1216_s8, %s1216_s8, %s1217_s11  }
  0x31   : > { %p1001_p9 = scmp.ge.s32.totalorder %s1213_s27, 1  ;;  %p298_p1 = scmp.lt.s32.totalorder %s1213_s27, 3 }
  0x33   : > { %p299_p3 = pnand %p1001_p9, %p298_p1 }
  0x34   : > { %s1365_s16 = sand.u32 (!%p299_p3), 1, %s1205_s25  }
  0x35   : > { %302 = sbr.rel (%p299_p3) target bundleno = 1360 (0x550), region = 40  ;;  %s1002_s17 = sshll.u32 (!%p299_p3), %s1365_s16, 3 }
  0x36   : > { %s305_s18 = scalar_lea.sflag (!%p299_p3), [#allocation3], %s1365_s16  ;;  %s1369_s15 = scalar_lea.vmem (!%p299_p3), [#allocation2], %s1002_s17 }
  0x3c   : > { %1192 = dma.done.wait (%p1304_p6), %s305_s18, 128  }
  0x3d   : > { %1194 = vsyncadd (%p1304_p6), %s305_s18, 4294967168  ;;  %p366_p11 = scmp.lt.s32.totalorder %s1282_s28, 1  ;;  %p378_p12 = scmp.lt.s32.totalorder %s1282_s28, 3  ;;  %v1218_v0 = vmov 0.0   ;;  %vm1219_vm0 = vmmov 0   ;;  %vm395_vm1 = vcmask 517120  }
  0x3e   : > { %1038 = vmatprep.subr.mxu0 %v1218_v0  ;;  %1043 = vmatprep.subr.mxu1 %v1218_v0  ;;  %vm420_vm2 = vcmask 1041409   ;;  %vm423_vm3 = vcmask 1042434   ;;  %vm426_vm4 = vcmask 1043459   ;;  %vm428_vm5 = vcmask 523264   ;;  %v402_v21 = vld [vmem:[%s1369_s15] sm:$0x3] }
  0x3f   : > { %s1380_s20 = scalar_select %p366_p11, %s1282_s28, 1  ;;  %1040 = vmatprep.mubr.msk.f32.mxu0 %vm1219_vm0, %v1218_v0  ;;  %1045 = vmatprep.mubr.msk.f32.mxu1 %vm1219_vm0, %v1218_v0  ;;  %vm505_vm6 = vcmask 25600   ;;  %v403_v22 = vld [vmem:[%s1369_s15 + $0x2] sm:$0x3]  ;;  %v404_v23 = vld [vmem:[%s1369_s15 + $0x4] sm:$0x3] }
  0x40   : > { %s379_s12 = scalar_select %p378_p12, %s1282_s28, 3  ;;  %v521_v25 = vrot.slane %v403_v22, 7  ;;  %v523_v26 = vrot.slane %v404_v23, 6  ;;  %vm531_vm7 = vcmask 1043456   ;;  %vm527_vm8 = vcmask 31744  }
  0x41   : > { %s1005_s22 = sshll.u32 %s1380_s20, 1  ;;  %s1004_s10 = sshll.u32 %s1380_s20, 2  ;;  %v697_v52 = vrot.slane %v402_v21, 1  ;;  %v699_v53 = vrot.slane %v404_v23, 7 }
  0x42   : > { %s373_s19 = scalar_lea.vmem %s1496_s1, %s1005_s22  ;;  %s1027_s21 = sshll.u32 %s379_s12, 5  ;;  %v522_v28 = vsel %vm420_vm2, %v521_v25, %v402_v21 }
  0x43   : > { %s905_s11 = scalar_lea.vmem %s1501_s6, %s1027_s21  ;;  %v393_v1 = vld [vmem:[%s373_s19] sm:$0x3]  ;;  %s382_s4 = scalar_lea.vmem %s1498_s3, %s1027_s21  ;;  %v524_v29 = vsel %vm423_vm3, %v523_v26, %v522_v28  ;;  %v698_v54 = vsel %vm420_vm2, %v403_v22, %v697_v52 }
  0x44   : > { %1012 = vst.msk [vmem:[%s905_s11 + $0x6] sm:$0x3] %vm395_vm1, %v393_v1  ;;  %v425_v7 = vrot.slane %v393_v1, 5  ;;  %s369_s29 = scalar_lea.vmem %s1495_s0, %s1004_s10  ;;  %s377_s21 = scalar_lea.vmem %s1497_s2, %s1005_s22  ;;  %v609_v36 = vrot.slane %v393_v1, 6  ;;  %v700_v56 = vsel %vm423_vm3, %v699_v53, %v698_v54 }
  0x45   : > { %v414_v11 = vld [vmem:[%s369_s29] sm:$0xf]  ;;  %s1003_s15 = sshll.u32 %s1365_s16, 1  ;;  %s1029_s22 = sshll.u32 %s1282_s28, 9 }
  0x46   : > { %v394_v24 = vld [vmem:[%s377_s21] sm:$0x3]  ;;  %v604_v40 = vrot.slane %v414_v11, 2  ;;  %s365_s9 = scalar_lea.vmem [#allocation5], %s1003_s15  ;;  %s918_s17 = scalar_lea.hbm %s1502_s7, %s1029_s22 }
  0x47   : > { %v525_v27 = vrot.slane %v394_v24, 5  ;;  %v701_v55 = vrot.slane %v394_v24, 6  ;;  %397 = vst.msk [vmem:[%s365_s9] sm:$0x3] %vm395_vm1, %v394_v24  ;;  %s817_s18 = sshll.u32 %s365_s9, 4  ;;  %s1452_s12 = scalar_lea.hbm %s918_s17, 96  ;;  %s818_s18 = int_to_ptr.vmem [resolvable:$true] %s817_s18 }
  0x48   : > { %s796_s23 = scalar_lea.sflag [#allocation4], %s1365_s16  ;;  %s1146_s29 = scalar_lea.vmem %s818_s18, 32 }
  0x49   : > { %v526_v30 = vsel %vm426_vm4, %v525_v27, %v524_v29  ;;  %v702_v57 = vsel %vm426_vm4, %v701_v55, %v700_v56  ;;  %p1147_p6 = scmp.ne.s32.totalorder %s818_s18, %s1146_s29  ;;  %p1512_p13 = scmp.ne.s32.totalorder %s1508_s13, 0 }
  0x4a   : > { %1044 = vmatpush3.msk.msra.mxu1 %vm531_vm7, %v526_v30 }
  0x4b   : > { %v398_v2 = vld [vmem:[%s382_s4] sm:$0x3]  ;;  %v399_v3 = vld [vmem:[%s382_s4 + $0x2] sm:$0x3]  ;;  %v400_v4 = vld [vmem:[%s382_s4 + $0x4] sm:$0x3]  ;;  %1048 = vmatprep.subr.mxu1 %v1218_v0  ;;  %p1148_p8 = pnand %p1147_p6, %p1512_p13 }
  0x4c   : > { %v419_v5 = vrot.slane %v399_v3, 7  ;;  %v422_v6 = vrot.slane %v400_v4, 6  ;;  %v605_v31 = vrot.slane %v398_v2, 1  ;;  %v607_v32 = vrot.slane %v400_v4, 7  ;;  %s1220_s4 = smov [#allocation5]  }
  0x4d   : > { %p1149_p10 = pneg %p1148_p8  ;;  %s1150_s19 = sshll.u32 %s1220_s4, 4  ;;  %s1151_s19 = int_to_ptr.vmem [resolvable:$false] %s1150_s19 }
  0x4e   : > { %v421_v8 = vsel %vm420_vm2, %v419_v5, %v398_v2  ;;  %v606_v33 = vsel %vm420_vm2, %v399_v3, %v605_v31  ;;  %s1152_s28 = scalar_lea.vmem %s1151_s19, 64  ;;  %p1153_p0 = scmp.lt.s32.totalorder %s818_s18, %s1151_s19 }
  0x4f   : > { %v424_v9 = vsel %vm423_vm3, %v422_v6, %v421_v8  ;;  %v608_v34 = vsel %vm423_vm3, %v607_v32, %v606_v33  ;;  %p1154_p2 = scmp.lt.s32.totalorder %s1152_s28, %s1146_s29 }
  0x50   : > { %v427_v10 = vsel %vm426_vm4, %v425_v7, %v424_v9  ;;  %v610_v39 = vsel %vm426_vm4, %v609_v36, %v608_v34 }
  0x51   : > { %1039 = vmatpush3.xpose.msk.msra.mxu0 %vm428_vm5, %v427_v10  ;;  %p1155_p4 = por %p1154_p2, %p1153_p0 }
  0x52   : > { %1053 = vmatprep.subr.mxu0 %v1218_v0 }
  0x53   : > { %p1156_p5 = pnand %p1155_p4, %p1149_p10 }
  0x54   : > { %1041 = vmatmul.mubr.msk.f32.vlgmr.msra.gmra.mrb[0].mxu0 %vm428_vm5, %v414_v11 }
  0x55   : > { %1055 = vmatprep.mubr.msk.f32.mxu0 %vm1219_vm0, %v1218_v0  ;;  %1054 = vmatpush3.msk.msra.mxu0 %vm531_vm7, %v702_v57 }
 0x127   : > { %v500_v12 = vpop.f32.mrb[0].mxu0 }
 0x128   : > { %v504_v13 = vmul.f32 0.125, %v500_v12  ;;  %v1042_v14 = vpop.f32.mrb[1].mxu0 }
 0x12a   : > { %v506_v15 = vsel %vm505_vm6, %v504_v13, -inf }
 0x12b   : > { %507 = vmax.xlane.f32.xlu0 %v506_v15 }
 0x1b8   : > { %v508_v16 = vpop.xlane.xlu0 %507 }
 0x1b9   : > { %v509_v17 = vsub.f32 %v504_v13, %v508_v16 }
 0x1bb   : > { %v510_v18 = vmul.f32 1.442695, %v509_v17 }
 0x1bd   : > { %1108 = vpow2.f32 %v510_v18 }
 0x1c7   : > { %v1109_v19 = vpop.eup %1108 }
 0x1c8   : > { %v512_v20 = vsel %vm505_vm6, %v1109_v19, 0.0 }
 0x1c9   : > { %513 = vadd.xlane.f32.xlu0 %v512_v20 }
 0x256   : > { %v514_v35 = vpop.xlane.xlu0 %513 }
 0x257   : > { %1110 = vrcp.f32 %v514_v35 }
 0x261   : > { %v1111_v37 = vpop.eup %1110 }
 0x262   : > { %v516_v38 = vmul.f32 %v1111_v37, %v1109_v19 }
 0x264   : > { %1046 = vmatmul.mubr.msk.f32.vlgmr.msra.gmra.mrb[0].mxu1 %vm527_vm8, %v516_v38 }
 0x265   : > { %1049 = vmatpush3.xpose.msk.msra.mxu1 %vm428_vm5, %v610_v39  ;;  %1050 = vmatprep.mubr.msk.f32.mxu1 %vm1219_vm0, %v1218_v0 }
 0x268   : > { %1051 = vmatmul.mubr.msk.f32.vlgmr.msra.gmra.mrb[2].mxu1 %vm428_vm5, %v604_v40 }
 0x337   : > { %v1437_v41 = vpop.f32.mrb[0].mxu1 }
 0x338   : > { %v1047_v42 = vpop.f32.mrb[1].mxu1 }
 0x33b   : > { %v681_v43 = vpop.f32.mrb[2].mxu1 }
 0x33c   : > { %v685_v44 = vmul.f32 0.125, %v681_v43  ;;  %v1052_v45 = vpop.f32.mrb[3].mxu1 }
 0x33e   : > { %v686_v46 = vsel %vm505_vm6, %v685_v44, -inf }
 0x33f   : > { %687 = vmax.xlane.f32.xlu1 %v686_v46 }
 0x3cc   : > { %v688_v47 = vpop.xlane.xlu1 %687 }
 0x3cd   : > { %v689_v48 = vsub.f32 %v685_v44, %v688_v47 }
 0x3cf   : > { %v690_v49 = vmul.f32 1.442695, %v689_v48 }
 0x3d1   : > { %1112 = vpow2.f32 %v690_v49 }
 0x3db   : > { %v1113_v50 = vpop.eup %1112 }
 0x3dc   : > { %v692_v51 = vsel %vm505_vm6, %v1113_v50, 0.0 }
 0x3dd   : > { %693 = vadd.xlane.f32.xlu1 %v692_v51 }
 0x46a   : > { %v694_v58 = vpop.xlane.xlu1 %693 }
 0x46b   : > { %1114 = vrcp.f32 %v694_v58 }
 0x475   : > { %v1115_v59 = vpop.eup %1114 }
 0x476   : > { %v696_v60 = vmul.f32 %v1115_v59, %v1113_v50 }
 0x478   : > { %1056 = vmatmul.mubr.msk.f32.vlgmr.msra.gmra.mrb[2].mxu0 %vm527_vm8, %v696_v60 }
 0x479   : > { %1159 = shalt.err (!%p1156_p5)
}
 0x47a   : > { %s1174_s21 = scalar_lea.hbm %s918_s17, 128  ;;  %s1164_s22 = scalar_lea.hbm %s1502_s7, 2048 }
 0x47b   : > { %p1161_p7 = scmp.ne.s32.totalorder %s1452_s12, %s1174_s21  ;;  %p1165_p3 = scmp.lt.u32.totalorder %s1452_s12, %s1502_s7 }
 0x47c   : > { %p1166_p11 = scmp.lt.u32.totalorder %s1164_s22, %s1174_s21  ;;  %p1168_p6 = scmp.lt.u32.totalorder %s1174_s21, %s1452_s12 }
 0x47d   : > { %p1162_p9 = pnand %p1161_p7, %p1512_p13 }
 0x47e   : > { %p1167_p12 = por %p1166_p11, %p1165_p3 }
 0x47f   : > { %p1163_p1 = pneg %p1162_p9 }
 0x480   : > { %p1169_p8 = por %p1168_p6, %p1167_p12 }
 0x482   : > { %p1170_p10 = pnand %p1169_p8, %p1163_p1 }
 0x484   : > { %1173 = shalt.err (!%p1170_p10)
}
 0x485   : > { %1060 = dma.vmem_to_hbm [thread:$0]  (%p1512_p13), %s818_s18, 32, %s1452_s12, %s796_s23   ;;  %vm781_vm9 = vcmask 1041408   ;;  %vm783_vm10 = vcmask 519168  }
 0x486   : > { %s386_s29 = scalar_lea.vmem %s1500_s5, %s1004_s10 }
 0x54b   : > { %v774_v61 = vpop.f32.mrb[2].mxu0 }
 0x54c   : > { %v779_v62 = vrot.slane %v774_v61, 6  ;;  %v1057_v63 = vpop.f32.mrb[3].mxu0 }
 0x54e   : > { %v782_v0 = vsel %vm781_vm9, %v1437_v41, %v779_v62 }
 0x54f   : > { %784 = vst.msk [vmem:[%s386_s29] sm:$0xf] %vm783_vm10, %v782_v0 }
 0x550 PF: > { %s845_s13 = sand.u32 1, %s1201_s24   ;;  %p1513_p0 = scmp.ne.s32.totalorder %s1509_s14, 0 }
 0x551   : > { %p1514_p13 = scmp.ge.s32.totalorder %s1213_s27, 2  ;;  %s846_s18 = scalar_lea.sflag [#allocation4], %s845_s13 }
 0x553   : > { %p1067_p2 = pnand %p1514_p13, %p1513_p0 }
 0x555   : > { %1196 = dma.done.wait (!%p1067_p2), %s846_s18, 32  }
 0x556   : > { %1198 = vsyncadd (!%p1067_p2), %s846_s18, 4294967264  ;;  %s1515_s10 = sld [smem:[#allocation8_spill]]  ;;  %p21_p4 = scmp.ge.s32.totalorder %s1286_s30, 4  }
 0x557   : > { %s1516_s24 = smov %s1205_s25  ;;  %s1517_s25 = smov %s1209_s26 }
 0x558   : > { %s1519_s27 = smov %s1286_s30  ;;  %23 = sbr.rel (!%p21_p4) target bundleno = 7 (0x7), region = 121 }
 0x55c   : > { %s1518_s26 = smov %s1515_s10 }
 0x55f   :  { %851 = vsyncpa [#allocation3], 1 }
 0x560   :  { %853 = vsyncpa [#allocation3 + $0x1], 1 }
 0x561   :  { %854 = vsyncpa [#allocation4], 1 }
 0x562   :  { %856 = vsyncpa [#allocation4 + $0x1], 1 }

// kernel: fwd.5
= control target key start
LH: loop header
LB: loop body
LE: loop exit
PB: predicated region body
PF: predicated region fallthrough
CT: control target
= control target key end

     0   :  { %12 = vsyncpa [#allocation6], 0  ;;  %s1806_s24 = smov 0   ;;  %s1808_s25 = smov 0   ;;  %s2396_s0 = inlined_call_operand.vmem [shape: f32[2,256], index: 0, kind: input, shape index: {}]   ;;  %s2397_s1 = inlined_call_operand.vmem [shape: f32[2,256], index: 1, kind: input, shape index: {}]   ;;  %s2398_s2 = inlined_call_operand.hbm [shape: f32[256,256], index: 2, kind: input, shape index: {}]   ;;  %s2399_s3 = inlined_call_operand.vmem [shape: f32[1,256], index: 3, kind: input, shape index: {}]   ;;  %s2400_s4 = inlined_call_operand.vmem [shape: f32[256,768], index: 4, kind: input, shape index: {}]   ;;  %s2401_s5 = inlined_call_operand.vmem [shape: f32[256,768], index: 5, kind: input, shape index: {}]   ;;  %s2402_s6 = inlined_call_operand.vmem [shape: f32[768,256], index: 6, kind: input, shape index: {}]   ;;  %s2403_s7 = inlined_call_operand.vmem [shape: f32[2,256], index: 7, kind: output, shape index: {}]  }
   0x1   :  { %s1810_s26 = smov 0  }
   0x2 LB: > { %s1822_s27 = sadd.s32 4294967295, %s1757_s26   ;;  %s1825_s28 = sadd.s32 1, %s1757_s26   ;;  %s1757_s26 = sphi %s1810_s26, %s2417_s26   ;;  %s1753_s25 = sphi %s1808_s25, %s2416_s25   ;;  %s1749_s24 = sphi %s1806_s24, %s2415_s24  }
   0x3   : > { %s106_s29 = ssub.s32 %s1757_s26, %s1825_s28  ;;  %s109_s30 = sadd.s32 1, %s1753_s25 }
   0x4   : > { %p107_p0 = scmp.eq.s32.totalorder %s106_s29, 0  ;;  %p116_p1 = scmp.ne.s32.totalorder %s1753_s25, %s1749_s24 }
   0x5   : > { %p117_p2 = scmp.eq.s32.totalorder %s1757_s26, 0  ;;  %p1369_p3 = scmp.ge.s32.totalorder %s1757_s26, 1 }
   0x6   : > { %s1835_s8 = scalar_select %p107_p0, %s1753_s25, %s109_s30  }
   0x7   : > { %p1837_p4 = por %p117_p2, %p116_p1  ;;  %p206_p5 = scmp.lt.s32.totalorder %s1757_s26, 4 }
   0x8   : > { %p2404_p7 = scmp.eq.s32.totalorder %s1822_s27, 0  ;;  %s1759_s11 = smov [#allocation5]  }
   0x9   : > { %s2406_s9 = scalar_select %p1837_p4, 1, 0 }
   0xa   : > { %p1844_p8 = pnand %p1369_p3, %p206_p5  ;;  %s224_s12 = sshll.u32 %s1759_s11, 4  ;;  %s225_s12 = int_to_ptr.vmem [resolvable:$true] %s224_s12 }
   0xb   : > { %s1703_s16 = scalar_lea.hbm %s2398_s2, 8192 }
   0xc   : > { %s2407_s10 = scalar_select %p1844_p8, 1, 0 }
   0xd   : > { %p1656_p9 = pneg %p1844_p8  ;;  %p1704_p11 = scmp.ne.s32.totalorder %s2398_s2, %s1703_s16 }
   0xe   : > { %p1710_p1 = scmp.lt.u32.totalorder %s1703_s16, %s2398_s2 }
   0xf   : > { %p1852_p10 = pnand %p2404_p7, %p1656_p9 }
  0x11   : > { %p1705_p12 = pneg %p1852_p10 }
  0x13   : > { %p1706_p13 = pnand %p1705_p12, %p1704_p11 }
  0x15   : > { %p1707_p0 = pneg %p1706_p13 }
  0x17   : > { %p1712_p2 = pnand %p1710_p1, %p1707_p0 }
  0x19   : > { %1715 = shalt.err (!%p1712_p2)
}
  0x1a   : > { %s1716_s21 = scalar_lea.vmem %s225_s12, 8192  ;;  %p1724_p6 = scmp.lt.s32.totalorder %s225_s12, %s225_s12 }
  0x1b   : > { %p1717_p3 = scmp.ne.s32.totalorder %s225_s12, %s1716_s21  ;;  %p1725_p7 = scmp.lt.s32.totalorder %s1716_s21, %s1716_s21 }
  0x1d   : > { %p1719_p5 = pnand %p1717_p3, %p1705_p12  ;;  %p1726_p8 = por %p1725_p7, %p1724_p6 }
  0x1f   : > { %p1720_p9 = pneg %p1719_p5 }
  0x21   : > { %p1727_p4 = pnand %p1726_p8, %p1720_p9 }
  0x23   : > { %1730 = shalt.err (!%p1727_p4)
}
  0x24   : > { %s1760_s22 = smov 256   ;;  %s1761_s23 = smov 16  }
  0x25   : > { %1659 = dma.hbm_to_vmem [thread:$0]  (!%p1852_p10), %s2398_s2, 8192, %s225_s12, [#allocation6], %s1760_s22, %s1760_s22, %s1761_s23  }
  0x26   : > { %p1371_p11 = scmp.ge.s32.totalorder %s1757_s26, 3 }
  0x27   : > { %p2409_p13 = scmp.ne.s32.totalorder (!%p1371_p11), %s2406_s9, 0 }
  0x28   : > { %237 = sbr.rel (%p1371_p11) target bundleno = 120 (0x78), region = 32 }
  0x2f   : > { %240 = sbr.rel (!%p2409_p13) target bundleno = 83 (0x53), region = 36  ;;  %s242_s11 = sand.u32 (%p2409_p13), 1, %s1753_s25  }
  0x30   : > { %s1393_s14 = sshll.u32 (%p2409_p13), %s1757_s26, 4  ;;  %s1372_s15 = sshll.u32 (%p2409_p13), %s242_s11, 9 }
  0x31   : > { %s1880_s18 = scalar_lea.vmem (%p2409_p13), %s2400_s4, %s1393_s14  ;;  %s1885_s12 = scalar_lea.vmem (%p2409_p13), [#allocation7], %s1372_s15 }
  0x32   : > { %v260_v0 = vld [vmem:[%s1880_s18] sm:$0xff] (%p2409_p13)  ;;  %v262_v1 = vld [vmem:[%s1880_s18 + $0x8] sm:$0xff] (%p2409_p13)  ;;  %v264_v2 = vld [vmem:[%s1880_s18 + $0x30] sm:$0xff] (%p2409_p13) }
  0x33   : > { %261 = vst [vmem:[%s1885_s12] sm:$0xff] (%p2409_p13), %v260_v0  ;;  %263 = vst [vmem:[%s1885_s12 + $0x8] sm:$0xff] (%p2409_p13), %v262_v1  ;;  %v266_v3 = vld [vmem:[%s1880_s18 + $0x38] sm:$0xff] (%p2409_p13)  ;;  %v268_v4 = vld [vmem:[%s1880_s18 + $0x60] sm:$0xff] (%p2409_p13) }
  0x34   : > { %265 = vst [vmem:[%s1885_s12 + $0x10] sm:$0xff] (%p2409_p13), %v264_v2  ;;  %v270_v5 = vld [vmem:[%s1880_s18 + $0x68] sm:$0xff] (%p2409_p13)  ;;  %267 = vst [vmem:[%s1885_s12 + $0x18] sm:$0xff] (%p2409_p13), %v266_v3  ;;  %v272_v6 = vld [vmem:[%s1880_s18 + $0x90] sm:$0xff] (%p2409_p13) }
  0x35   : > { %269 = vst [vmem:[%s1885_s12 + $0x20] sm:$0xff] (%p2409_p13), %v268_v4  ;;  %271 = vst [vmem:[%s1885_s12 + $0x28] sm:$0xff] (%p2409_p13), %v270_v5  ;;  %v274_v7 = vld [vmem:[%s1880_s18 + $0x98] sm:$0xff] (%p2409_p13)  ;;  %v276_v8 = vld [vmem:[%s1880_s18 + $0xc0] sm:$0xff] (%p2409_p13) }
  0x36   : > { %273 = vst [vmem:[%s1885_s12 + $0x30] sm:$0xff] %v272_v6  ;;  %275 = vst [vmem:[%s1885_s12 + $0x38] sm:$0xff] %v274_v7  ;;  %v278_v9 = vld [vmem:[%s1880_s18 + $0xc8] sm:$0xff]  ;;  %v280_v10 = vld [vmem:[%s1880_s18 + $0xf0] sm:$0xff] }
  0x37   : > { %277 = vst [vmem:[%s1885_s12 + $0x40] sm:$0xff] %v276_v8  ;;  %v282_v11 = vld [vmem:[%s1880_s18 + $0xf8] sm:$0xff]  ;;  %279 = vst [vmem:[%s1885_s12 + $0x48] sm:$0xff] %v278_v9  ;;  %v284_v12 = vld [vmem:[%s1880_s18 + $0x120] sm:$0xff] }
  0x38   : > { %281 = vst [vmem:[%s1885_s12 + $0x50] sm:$0xff] %v280_v10  ;;  %283 = vst [vmem:[%s1885_s12 + $0x58] sm:$0xff] %v282_v11  ;;  %v286_v13 = vld [vmem:[%s1880_s18 + $0x128] sm:$0xff]  ;;  %v288_v14 = vld [vmem:[%s1880_s18 + $0x150] sm:$0xff] }
  0x39   : > { %285 = vst [vmem:[%s1885_s12 + $0x60] sm:$0xff] %v284_v12  ;;  %287 = vst [vmem:[%s1885_s12 + $0x68] sm:$0xff] %v286_v13  ;;  %v290_v15 = vld [vmem:[%s1880_s18 + $0x158] sm:$0xff]  ;;  %v292_v16 = vld [vmem:[%s1880_s18 + $0x180] sm:$0xff] }
  0x3a   : > { %289 = vst [vmem:[%s1885_s12 + $0x70] sm:$0xff] %v288_v14  ;;  %v294_v17 = vld [vmem:[%s1880_s18 + $0x188] sm:$0xff]  ;;  %291 = vst [vmem:[%s1885_s12 + $0x78] sm:$0xff] %v290_v15  ;;  %v296_v18 = vld [vmem:[%s1880_s18 + $0x1b0] sm:$0xff] }
  0x3b   : > { %293 = vst [vmem:[%s1885_s12 + $0x80] sm:$0xff] %v292_v16  ;;  %295 = vst [vmem:[%s1885_s12 + $0x88] sm:$0xff] %v294_v17  ;;  %v298_v19 = vld [vmem:[%s1880_s18 + $0x1b8] sm:$0xff]  ;;  %v300_v20 = vld [vmem:[%s1880_s18 + $0x1e0] sm:$0xff] }
  0x3c   : > { %297 = vst [vmem:[%s1885_s12 + $0x90] sm:$0xff] %v296_v18  ;;  %299 = vst [vmem:[%s1885_s12 + $0x98] sm:$0xff] %v298_v19  ;;  %v302_v21 = vld [vmem:[%s1880_s18 + $0x1e8] sm:$0xff]  ;;  %v304_v22 = vld [vmem:[%s1880_s18 + $0x210] sm:$0xff] }
  0x3d   : > { %301 = vst [vmem:[%s1885_s12 + $0xa0] sm:$0xff] %v300_v20  ;;  %v306_v23 = vld [vmem:[%s1880_s18 + $0x218] sm:$0xff]  ;;  %303 = vst [vmem:[%s1885_s12 + $0xa8] sm:$0xff] %v302_v21  ;;  %v308_v24 = vld [vmem:[%s1880_s18 + $0x240] sm:$0xff] }
  0x3e   : > { %305 = vst [vmem:[%s1885_s12 + $0xb0] sm:$0xff] %v304_v22  ;;  %307 = vst [vmem:[%s1885_s12 + $0xb8] sm:$0xff] %v306_v23  ;;  %v310_v25 = vld [vmem:[%s1880_s18 + $0x248] sm:$0xff]  ;;  %v312_v26 = vld [vmem:[%s1880_s18 + $0x270] sm:$0xff] }
  0x3f   : > { %309 = vst [vmem:[%s1885_s12 + $0xc0] sm:$0xff] %v308_v24  ;;  %311 = vst [vmem:[%s1885_s12 + $0xc8] sm:$0xff] %v310_v25  ;;  %v314_v27 = vld [vmem:[%s1880_s18 + $0x278] sm:$0xff]  ;;  %v316_v28 = vld [vmem:[%s1880_s18 + $0x2a0] sm:$0xff] }
  0x40   : > { %313 = vst [vmem:[%s1885_s12 + $0xd0] sm:$0xff] %v312_v26  ;;  %v318_v29 = vld [vmem:[%s1880_s18 + $0x2a8] sm:$0xff]  ;;  %315 = vst [vmem:[%s1885_s12 + $0xd8] sm:$0xff] %v314_v27  ;;  %v320_v30 = vld [vmem:[%s1880_s18 + $0x2d0] sm:$0xff] }
  0x41   : > { %317 = vst [vmem:[%s1885_s12 + $0xe0] sm:$0xff] %v316_v28  ;;  %319 = vst [vmem:[%s1885_s12 + $0xe8] sm:$0xff] %v318_v29  ;;  %v322_v31 = vld [vmem:[%s1880_s18 + $0x2d8] sm:$0xff]  ;;  %v324_v32 = vld [vmem:[%s1880_s18 + $0x300] sm:$0xff] }
  0x42   : > { %321 = vst [vmem:[%s1885_s12 + $0xf0] sm:$0xff] %v320_v30  ;;  %323 = vst [vmem:[%s1885_s12 + $0xf8] sm:$0xff] %v322_v31  ;;  %v326_v33 = vld [vmem:[%s1880_s18 + $0x308] sm:$0xff]  ;;  %v328_v34 = vld [vmem:[%s1880_s18 + $0x330] sm:$0xff] }
  0x43   : > { %325 = vst [vmem:[%s1885_s12 + $0x100] sm:$0xff] %v324_v32  ;;  %v330_v35 = vld [vmem:[%s1880_s18 + $0x338] sm:$0xff]  ;;  %327 = vst [vmem:[%s1885_s12 + $0x108] sm:$0xff] %v326_v33  ;;  %v332_v36 = vld [vmem:[%s1880_s18 + $0x360] sm:$0xff] }
  0x44   : > { %329 = vst [vmem:[%s1885_s12 + $0x110] sm:$0xff] %v328_v34  ;;  %331 = vst [vmem:[%s1885_s12 + $0x118] sm:$0xff] %v330_v35  ;;  %v334_v37 = vld [vmem:[%s1880_s18 + $0x368] sm:$0xff]  ;;  %v336_v38 = vld [vmem:[%s1880_s18 + $0x390] sm:$0xff] }
  0x45   : > { %333 = vst [vmem:[%s1885_s12 + $0x120] sm:$0xff] %v332_v36  ;;  %335 = vst [vmem:[%s1885_s12 + $0x128] sm:$0xff] %v334_v37  ;;  %v338_v39 = vld [vmem:[%s1880_s18 + $0x398] sm:$0xff]  ;;  %v340_v40 = vld [vmem:[%s1880_s18 + $0x3c0] sm:$0xff] }
  0x46   : > { %337 = vst [vmem:[%s1885_s12 + $0x130] sm:$0xff] %v336_v38  ;;  %v342_v41 = vld [vmem:[%s1880_s18 + $0x3c8] sm:$0xff]  ;;  %339 = vst [vmem:[%s1885_s12 + $0x138] sm:$0xff] %v338_v39  ;;  %v344_v42 = vld [vmem:[%s1880_s18 + $0x3f0] sm:$0xff] }
  0x47   : > { %341 = vst [vmem:[%s1885_s12 + $0x140] sm:$0xff] %v340_v40  ;;  %343 = vst [vmem:[%s1885_s12 + $0x148] sm:$0xff] %v342_v41  ;;  %v346_v43 = vld [vmem:[%s1880_s18 + $0x3f8] sm:$0xff]  ;;  %v348_v44 = vld [vmem:[%s1880_s18 + $0x420] sm:$0xff] }
  0x48   : > { %345 = vst [vmem:[%s1885_s12 + $0x150] sm:$0xff] %v344_v42  ;;  %347 = vst [vmem:[%s1885_s12 + $0x158] sm:$0xff] %v346_v43  ;;  %v350_v45 = vld [vmem:[%s1880_s18 + $0x428] sm:$0xff]  ;;  %v352_v46 = vld [vmem:[%s1880_s18 + $0x450] sm:$0xff] }
  0x49   : > { %349 = vst [vmem:[%s1885_s12 + $0x160] sm:$0xff] %v348_v44  ;;  %v354_v47 = vld [vmem:[%s1880_s18 + $0x458] sm:$0xff]  ;;  %351 = vst [vmem:[%s1885_s12 + $0x168] sm:$0xff] %v350_v45  ;;  %v356_v48 = vld [vmem:[%s1880_s18 + $0x480] sm:$0xff] }
  0x4a   : > { %353 = vst [vmem:[%s1885_s12 + $0x170] sm:$0xff] %v352_v46  ;;  %355 = vst [vmem:[%s1885_s12 + $0x178] sm:$0xff] %v354_v47  ;;  %v358_v49 = vld [vmem:[%s1880_s18 + $0x488] sm:$0xff]  ;;  %v360_v50 = vld [vmem:[%s1880_s18 + $0x4b0] sm:$0xff] }
  0x4b   : > { %357 = vst [vmem:[%s1885_s12 + $0x180] sm:$0xff] %v356_v48  ;;  %359 = vst [vmem:[%s1885_s12 + $0x188] sm:$0xff] %v358_v49  ;;  %v362_v51 = vld [vmem:[%s1880_s18 + $0x4b8] sm:$0xff]  ;;  %v364_v52 = vld [vmem:[%s1880_s18 + $0x4e0] sm:$0xff] }
  0x4c   : > { %361 = vst [vmem:[%s1885_s12 + $0x190] sm:$0xff] %v360_v50  ;;  %v366_v53 = vld [vmem:[%s1880_s18 + $0x4e8] sm:$0xff]  ;;  %363 = vst [vmem:[%s1885_s12 + $0x198] sm:$0xff] %v362_v51  ;;  %v368_v54 = vld [vmem:[%s1880_s18 + $0x510] sm:$0xff] }
  0x4d   : > { %365 = vst [vmem:[%s1885_s12 + $0x1a0] sm:$0xff] %v364_v52  ;;  %367 = vst [vmem:[%s1885_s12 + $0x1a8] sm:$0xff] %v366_v53  ;;  %v370_v55 = vld [vmem:[%s1880_s18 + $0x518] sm:$0xff]  ;;  %v372_v56 = vld [vmem:[%s1880_s18 + $0x540] sm:$0xff] }
  0x4e   : > { %369 = vst [vmem:[%s1885_s12 + $0x1b0] sm:$0xff] %v368_v54  ;;  %371 = vst [vmem:[%s1885_s12 + $0x1b8] sm:$0xff] %v370_v55  ;;  %v374_v57 = vld [vmem:[%s1880_s18 + $0x548] sm:$0xff]  ;;  %v376_v58 = vld [vmem:[%s1880_s18 + $0x570] sm:$0xff] }
  0x4f   : > { %373 = vst [vmem:[%s1885_s12 + $0x1c0] sm:$0xff] %v372_v56  ;;  %v378_v59 = vld [vmem:[%s1880_s18 + $0x578] sm:$0xff]  ;;  %375 = vst [vmem:[%s1885_s12 + $0x1c8] sm:$0xff] %v374_v57  ;;  %v380_v60 = vld [vmem:[%s1880_s18 + $0x5a0] sm:$0xff] }
  0x50   : > { %377 = vst [vmem:[%s1885_s12 + $0x1d0] sm:$0xff] %v376_v58  ;;  %379 = vst [vmem:[%s1885_s12 + $0x1d8] sm:$0xff] %v378_v59  ;;  %v382_v61 = vld [vmem:[%s1880_s18 + $0x5a8] sm:$0xff]  ;;  %v384_v62 = vld [vmem:[%s1880_s18 + $0x5d0] sm:$0xff] }
  0x51   : > { %381 = vst [vmem:[%s1885_s12 + $0x1e0] sm:$0xff] %v380_v60  ;;  %383 = vst [vmem:[%s1885_s12 + $0x1e8] sm:$0xff] %v382_v61  ;;  %v386_v63 = vld [vmem:[%s1880_s18 + $0x5d8] sm:$0xff] }
  0x52   : > { %385 = vst [vmem:[%s1885_s12 + $0x1f0] sm:$0xff] %v384_v62  ;;  %387 = vst [vmem:[%s1885_s12 + $0x1f8] sm:$0xff] %v386_v63 }
  0x53 PF: > { %p2410_p4 = scmp.ne.s32.totalorder %s2406_s9, 0 }
  0x54   : > { %s395_s13 = sand.u32 (%p2410_p4), 1, %s1753_s25   ;;  %s1394_s19 = sshll.u32 (%p2410_p4), %s1757_s26, 4 }
  0x55   : > { %393 = sbr.rel (!%p2410_p4) target bundleno = 120 (0x78), region = 59  ;;  %s1375_s20 = sshll.u32 (%p2410_p4), %s395_s13, 9 }
  0x56   : > { %s2019_s23 = scalar_lea.vmem (%p2410_p4), %s2401_s5, %s1394_s19  ;;  %s2024_s9 = scalar_lea.vmem (%p2410_p4), [#allocation8], %s1375_s20 }
  0x57   : > { %v413_v0 = vld [vmem:[%s2019_s23] sm:$0xff] (%p2410_p4)  ;;  %v415_v1 = vld [vmem:[%s2019_s23 + $0x8] sm:$0xff] (%p2410_p4)  ;;  %v417_v2 = vld [vmem:[%s2019_s23 + $0x30] sm:$0xff] (%p2410_p4) }
  0x58   : > { %414 = vst [vmem:[%s2024_s9] sm:$0xff] (%p2410_p4), %v413_v0  ;;  %416 = vst [vmem:[%s2024_s9 + $0x8] sm:$0xff] (%p2410_p4), %v415_v1  ;;  %v419_v3 = vld [vmem:[%s2019_s23 + $0x38] sm:$0xff] (%p2410_p4)  ;;  %v421_v4 = vld [vmem:[%s2019_s23 + $0x60] sm:$0xff] (%p2410_p4) }
  0x59   : > { %418 = vst [vmem:[%s2024_s9 + $0x10] sm:$0xff] (%p2410_p4), %v417_v2  ;;  %v423_v5 = vld [vmem:[%s2019_s23 + $0x68] sm:$0xff] (%p2410_p4)  ;;  %420 = vst [vmem:[%s2024_s9 + $0x18] sm:$0xff] (%p2410_p4), %v419_v3  ;;  %v425_v6 = vld [vmem:[%s2019_s23 + $0x90] sm:$0xff] (%p2410_p4) }
  0x5a   : > { %422 = vst [vmem:[%s2024_s9 + $0x20] sm:$0xff] (%p2410_p4), %v421_v4  ;;  %424 = vst [vmem:[%s2024_s9 + $0x28] sm:$0xff] (%p2410_p4), %v423_v5  ;;  %v427_v7 = vld [vmem:[%s2019_s23 + $0x98] sm:$0xff] (%p2410_p4)  ;;  %v429_v8 = vld [vmem:[%s2019_s23 + $0xc0] sm:$0xff] (%p2410_p4) }
  0x5b   : > { %426 = vst [vmem:[%s2024_s9 + $0x30] sm:$0xff] (%p2410_p4), %v425_v6  ;;  %428 = vst [vmem:[%s2024_s9 + $0x38] sm:$0xff] (%p2410_p4), %v427_v7  ;;  %v431_v9 = vld [vmem:[%s2019_s23 + $0xc8] sm:$0xff] (%p2410_p4)  ;;  %v433_v10 = vld [vmem:[%s2019_s23 + $0xf0] sm:$0xff] (%p2410_p4) }
  0x5c   : > { %430 = vst [vmem:[%s2024_s9 + $0x40] sm:$0xff] %v429_v8  ;;  %v435_v11 = vld [vmem:[%s2019_s23 + $0xf8] sm:$0xff]  ;;  %432 = vst [vmem:[%s2024_s9 + $0x48] sm:$0xff] %v431_v9  ;;  %v437_v12 = vld [vmem:[%s2019_s23 + $0x120] sm:$0xff] }
  0x5d   : > { %434 = vst [vmem:[%s2024_s9 + $0x50] sm:$0xff] %v433_v10  ;;  %436 = vst [vmem:[%s2024_s9 + $0x58] sm:$0xff] %v435_v11  ;;  %v439_v13 = vld [vmem:[%s2019_s23 + $0x128] sm:$0xff]  ;;  %v441_v14 = vld [vmem:[%s2019_s23 + $0x150] sm:$0xff] }
  0x5e   : > { %438 = vst [vmem:[%s2024_s9 + $0x60] sm:$0xff] %v437_v12  ;;  %440 = vst [vmem:[%s2024_s9 + $0x68] sm:$0xff] %v439_v13  ;;  %v443_v15 = vld [vmem:[%s2019_s23 + $0x158] sm:$0xff]  ;;  %v445_v16 = vld [vmem:[%s2019_s23 + $0x180] sm:$0xff] }
  0x5f   : > { %442 = vst [vmem:[%s2024_s9 + $0x70] sm:$0xff] %v441_v14  ;;  %v447_v17 = vld [vmem:[%s2019_s23 + $0x188] sm:$0xff]  ;;  %444 = vst [vmem:[%s2024_s9 + $0x78] sm:$0xff] %v443_v15  ;;  %v449_v18 = vld [vmem:[%s2019_s23 + $0x1b0] sm:$0xff] }
  0x60   : > { %446 = vst [vmem:[%s2024_s9 + $0x80] sm:$0xff] %v445_v16  ;;  %448 = vst [vmem:[%s2024_s9 + $0x88] sm:$0xff] %v447_v17  ;;  %v451_v19 = vld [vmem:[%s2019_s23 + $0x1b8] sm:$0xff]  ;;  %v453_v20 = vld [vmem:[%s2019_s23 + $0x1e0] sm:$0xff] }
  0x61   : > { %450 = vst [vmem:[%s2024_s9 + $0x90] sm:$0xff] %v449_v18  ;;  %452 = vst [vmem:[%s2024_s9 + $0x98] sm:$0xff] %v451_v19  ;;  %v455_v21 = vld [vmem:[%s2019_s23 + $0x1e8] sm:$0xff]  ;;  %v457_v22 = vld [vmem:[%s2019_s23 + $0x210] sm:$0xff] }
  0x62   : > { %454 = vst [vmem:[%s2024_s9 + $0xa0] sm:$0xff] %v453_v20  ;;  %v459_v23 = vld [vmem:[%s2019_s23 + $0x218] sm:$0xff]  ;;  %456 = vst [vmem:[%s2024_s9 + $0xa8] sm:$0xff] %v455_v21  ;;  %v461_v24 = vld [vmem:[%s2019_s23 + $0x240] sm:$0xff] }
  0x63   : > { %458 = vst [vmem:[%s2024_s9 + $0xb0] sm:$0xff] %v457_v22  ;;  %460 = vst [vmem:[%s2024_s9 + $0xb8] sm:$0xff] %v459_v23  ;;  %v463_v25 = vld [vmem:[%s2019_s23 + $0x248] sm:$0xff]  ;;  %v465_v26 = vld [vmem:[%s2019_s23 + $0x270] sm:$0xff] }
  0x64   : > { %462 = vst [vmem:[%s2024_s9 + $0xc0] sm:$0xff] %v461_v24  ;;  %464 = vst [vmem:[%s2024_s9 + $0xc8] sm:$0xff] %v463_v25  ;;  %v467_v27 = vld [vmem:[%s2019_s23 + $0x278] sm:$0xff]  ;;  %v469_v28 = vld [vmem:[%s2019_s23 + $0x2a0] sm:$0xff] }
  0x65   : > { %466 = vst [vmem:[%s2024_s9 + $0xd0] sm:$0xff] %v465_v26  ;;  %v471_v29 = vld [vmem:[%s2019_s23 + $0x2a8] sm:$0xff]  ;;  %468 = vst [vmem:[%s2024_s9 + $0xd8] sm:$0xff] %v467_v27  ;;  %v473_v30 = vld [vmem:[%s2019_s23 + $0x2d0] sm:$0xff] }
  0x66   : > { %470 = vst [vmem:[%s2024_s9 + $0xe0] sm:$0xff] %v469_v28  ;;  %472 = vst [vmem:[%s2024_s9 + $0xe8] sm:$0xff] %v471_v29  ;;  %v475_v31 = vld [vmem:[%s2019_s23 + $0x2d8] sm:$0xff]  ;;  %v477_v32 = vld [vmem:[%s2019_s23 + $0x300] sm:$0xff] }
  0x67   : > { %474 = vst [vmem:[%s2024_s9 + $0xf0] sm:$0xff] %v473_v30  ;;  %476 = vst [vmem:[%s2024_s9 + $0xf8] sm:$0xff] %v475_v31  ;;  %v479_v33 = vld [vmem:[%s2019_s23 + $0x308] sm:$0xff]  ;;  %v481_v34 = vld [vmem:[%s2019_s23 + $0x330] sm:$0xff] }
  0x68   : > { %478 = vst [vmem:[%s2024_s9 + $0x100] sm:$0xff] %v477_v32  ;;  %v483_v35 = vld [vmem:[%s2019_s23 + $0x338] sm:$0xff]  ;;  %480 = vst [vmem:[%s2024_s9 + $0x108] sm:$0xff] %v479_v33  ;;  %v485_v36 = vld [vmem:[%s2019_s23 + $0x360] sm:$0xff] }
  0x69   : > { %482 = vst [vmem:[%s2024_s9 + $0x110] sm:$0xff] %v481_v34  ;;  %484 = vst [vmem:[%s2024_s9 + $0x118] sm:$0xff] %v483_v35  ;;  %v487_v37 = vld [vmem:[%s2019_s23 + $0x368] sm:$0xff]  ;;  %v489_v38 = vld [vmem:[%s2019_s23 + $0x390] sm:$0xff] }
  0x6a   : > { %486 = vst [vmem:[%s2024_s9 + $0x120] sm:$0xff] %v485_v36  ;;  %488 = vst [vmem:[%s2024_s9 + $0x128] sm:$0xff] %v487_v37  ;;  %v491_v39 = vld [vmem:[%s2019_s23 + $0x398] sm:$0xff]  ;;  %v493_v40 = vld [vmem:[%s2019_s23 + $0x3c0] sm:$0xff] }
  0x6b   : > { %490 = vst [vmem:[%s2024_s9 + $0x130] sm:$0xff] %v489_v38  ;;  %v495_v41 = vld [vmem:[%s2019_s23 + $0x3c8] sm:$0xff]  ;;  %492 = vst [vmem:[%s2024_s9 + $0x138] sm:$0xff] %v491_v39  ;;  %v497_v42 = vld [vmem:[%s2019_s23 + $0x3f0] sm:$0xff] }
  0x6c   : > { %494 = vst [vmem:[%s2024_s9 + $0x140] sm:$0xff] %v493_v40  ;;  %496 = vst [vmem:[%s2024_s9 + $0x148] sm:$0xff] %v495_v41  ;;  %v499_v43 = vld [vmem:[%s2019_s23 + $0x3f8] sm:$0xff]  ;;  %v501_v44 = vld [vmem:[%s2019_s23 + $0x420] sm:$0xff] }
  0x6d   : > { %498 = vst [vmem:[%s2024_s9 + $0x150] sm:$0xff] %v497_v42  ;;  %500 = vst [vmem:[%s2024_s9 + $0x158] sm:$0xff] %v499_v43  ;;  %v503_v45 = vld [vmem:[%s2019_s23 + $0x428] sm:$0xff]  ;;  %v505_v46 = vld [vmem:[%s2019_s23 + $0x450] sm:$0xff] }
  0x6e   : > { %502 = vst [vmem:[%s2024_s9 + $0x160] sm:$0xff] %v501_v44  ;;  %v507_v47 = vld [vmem:[%s2019_s23 + $0x458] sm:$0xff]  ;;  %504 = vst [vmem:[%s2024_s9 + $0x168] sm:$0xff] %v503_v45  ;;  %v509_v48 = vld [vmem:[%s2019_s23 + $0x480] sm:$0xff] }
  0x6f   : > { %506 = vst [vmem:[%s2024_s9 + $0x170] sm:$0xff] %v505_v46  ;;  %508 = vst [vmem:[%s2024_s9 + $0x178] sm:$0xff] %v507_v47  ;;  %v511_v49 = vld [vmem:[%s2019_s23 + $0x488] sm:$0xff]  ;;  %v513_v50 = vld [vmem:[%s2019_s23 + $0x4b0] sm:$0xff] }
  0x70   : > { %510 = vst [vmem:[%s2024_s9 + $0x180] sm:$0xff] %v509_v48  ;;  %512 = vst [vmem:[%s2024_s9 + $0x188] sm:$0xff] %v511_v49  ;;  %v515_v51 = vld [vmem:[%s2019_s23 + $0x4b8] sm:$0xff]  ;;  %v517_v52 = vld [vmem:[%s2019_s23 + $0x4e0] sm:$0xff] }
  0x71   : > { %514 = vst [vmem:[%s2024_s9 + $0x190] sm:$0xff] %v513_v50  ;;  %v519_v53 = vld [vmem:[%s2019_s23 + $0x4e8] sm:$0xff]  ;;  %516 = vst [vmem:[%s2024_s9 + $0x198] sm:$0xff] %v515_v51  ;;  %v521_v54 = vld [vmem:[%s2019_s23 + $0x510] sm:$0xff] }
  0x72   : > { %518 = vst [vmem:[%s2024_s9 + $0x1a0] sm:$0xff] %v517_v52  ;;  %520 = vst [vmem:[%s2024_s9 + $0x1a8] sm:$0xff] %v519_v53  ;;  %v523_v55 = vld [vmem:[%s2019_s23 + $0x518] sm:$0xff]  ;;  %v525_v56 = vld [vmem:[%s2019_s23 + $0x540] sm:$0xff] }
  0x73   : > { %522 = vst [vmem:[%s2024_s9 + $0x1b0] sm:$0xff] %v521_v54  ;;  %524 = vst [vmem:[%s2024_s9 + $0x1b8] sm:$0xff] %v523_v55  ;;  %v527_v57 = vld [vmem:[%s2019_s23 + $0x548] sm:$0xff]  ;;  %v529_v58 = vld [vmem:[%s2019_s23 + $0x570] sm:$0xff] }
  0x74   : > { %526 = vst [vmem:[%s2024_s9 + $0x1c0] sm:$0xff] %v525_v56  ;;  %v531_v59 = vld [vmem:[%s2019_s23 + $0x578] sm:$0xff]  ;;  %528 = vst [vmem:[%s2024_s9 + $0x1c8] sm:$0xff] %v527_v57  ;;  %v533_v60 = vld [vmem:[%s2019_s23 + $0x5a0] sm:$0xff] }
  0x75   : > { %530 = vst [vmem:[%s2024_s9 + $0x1d0] sm:$0xff] %v529_v58  ;;  %532 = vst [vmem:[%s2024_s9 + $0x1d8] sm:$0xff] %v531_v59  ;;  %v535_v61 = vld [vmem:[%s2019_s23 + $0x5a8] sm:$0xff]  ;;  %v537_v62 = vld [vmem:[%s2019_s23 + $0x5d0] sm:$0xff] }
  0x76   : > { %534 = vst [vmem:[%s2024_s9 + $0x1e0] sm:$0xff] %v533_v60  ;;  %536 = vst [vmem:[%s2024_s9 + $0x1e8] sm:$0xff] %v535_v61  ;;  %v539_v63 = vld [vmem:[%s2019_s23 + $0x5d8] sm:$0xff] }
  0x77   : > { %538 = vst [vmem:[%s2024_s9 + $0x1f0] sm:$0xff] %v537_v62  ;;  %540 = vst [vmem:[%s2024_s9 + $0x1f8] sm:$0xff] %v539_v63 }
  0x78 PF: > { %p2411_p6 = scmp.ne.s32.totalorder %s2407_s10, 0 }
  0x79   : > { %p2412_p7 = scmp.eq.s32.totalorder (!%p2411_p6), %s1822_s27, 0 }
  0x7a   : > { %559 = sbr.rel (%p2411_p6) target bundleno = 1134 (0x46e), region = 86 }
  0x81   : > { %1744 = dma.done.wait (%p2412_p7), [#allocation6], 8192   ;;  %p2413_p8 = pmov %p2412_p7 }
  0x82   : > { %s566_s26 = sand.u32 1, %s1749_s24   ;;  %s1382_s29 = sshll.u32 %s1822_s27, 5 }
  0x83   : > { %1746 = vsyncadd (%p2413_p8), [#allocation6], 4294959104  ;;  %s1380_s30 = sshll.u32 %s566_s26, 9  ;;  %p612_p10 = scmp.lt.s32.totalorder %s1382_s29, 95 }
  0x84   : > { %s2164_s10 = scalar_lea.vmem [#allocation7], %s1380_s30  ;;  %s2166_s17 = scalar_lea.vmem [#allocation8], %s1380_s30 }
  0x85   : > { %s2419_s29 = smov (!%p612_p10, %s1382_s29), 95  ;;  %p2414_p12 = scmp.ne.s32.totalorder %s1822_s27, 0 }
  0x86   : > { %s1395_s11 = sshll.u32 %s2419_s29, 4  ;;  %v625_v0 = vld [vmem:[#allocation5 + $0x8] sm:$0xff] (!%p2414_p12)  ;;  %v627_v1 = vld [vmem:[#allocation5 + $0x18] sm:$0xff] (!%p2414_p12)  ;;  %v624_v2 = vld [vmem:[#allocation5] sm:$0xff] (!%p2414_p12)  ;;  %vm795_vm0 = vcmask (!%p2414_p12), 1041408  }
  0x87   : > { %s2162_s16 = scalar_lea.vmem %s2402_s6, %s1395_s11  ;;  %621 = sbr.rel (%p2414_p12) target bundleno = 593 (0x251), region = 102  ;;  %v1396_v3 = vpack.c.bf16 (!%p2414_p12), %v627_v1, %v625_v0  ;;  %v626_v4 = vld [vmem:[#allocation5 + $0x10] sm:$0xff] (!%p2414_p12)  ;;  %v629_v5 = vld [vmem:[#allocation5 + $0x28] sm:$0xff] (!%p2414_p12)  ;;  %v631_v6 = vld [vmem:[#allocation5 + $0x38] sm:$0xff] (!%p2414_p12) }
  0x88   : > { %v1398_v7 = vpack.c.bf16 (!%p2414_p12), %v626_v4, %v624_v2  ;;  %v1400_v8 = vpack.c.bf16 (!%p2414_p12), %v631_v6, %v629_v5  ;;  %v628_v9 = vld [vmem:[#allocation5 + $0x20] sm:$0xff] (!%p2414_p12)  ;;  %v630_v10 = vld [vmem:[#allocation5 + $0x30] sm:$0xff] (!%p2414_p12)  ;;  %v633_v11 = vld [vmem:[#allocation5 + $0x48] sm:$0xff] (!%p2414_p12) }
  0x89   : > { %1397 = vmatprep.subr.bf16.mxu0 (!%p2414_p12), %v1396_v3  ;;  %v635_v12 = vld [vmem:[#allocation5 + $0x58] sm:$0xff] (!%p2414_p12)  ;;  %v1402_v13 = vpack.c.bf16 (!%p2414_p12), %v630_v10, %v628_v9  ;;  %v632_v15 = vld [vmem:[#allocation5 + $0x40] sm:$0xff] (!%p2414_p12)  ;;  %v634_v16 = vld [vmem:[#allocation5 + $0x50] sm:$0xff] (!%p2414_p12) }
  0x8a   : > { %1399 = vmatpush1.bf16.msra.mxu0 (!%p2414_p12), %v1398_v7  ;;  %v1404_v14 = vpack.c.bf16 (!%p2414_p12), %v635_v12, %v633_v11  ;;  %v637_v17 = vld [vmem:[#allocation5 + $0x68] sm:$0xff] (!%p2414_p12)  ;;  %v639_v18 = vld [vmem:[#allocation5 + $0x78] sm:$0xff] (!%p2414_p12)  ;;  %v1406_v19 = vpack.c.bf16 (!%p2414_p12), %v634_v16, %v632_v15  ;;  %v636_v21 = vld [vmem:[#allocation5 + $0x60] sm:$0xff] (!%p2414_p12) }
  0x8b   : > { %1401 = vmatprep.subr.bf16.mxu0 (!%p2414_p12), %v1400_v8  ;;  %v1408_v20 = vpack.c.bf16 (!%p2414_p12), %v639_v18, %v637_v17  ;;  %v638_v22 = vld [vmem:[#allocation5 + $0x70] sm:$0xff] (!%p2414_p12)  ;;  %v641_v23 = vld [vmem:[#allocation5 + $0x88] sm:$0xff] (!%p2414_p12)  ;;  %v643_v24 = vld [vmem:[#allocation5 + $0x98] sm:$0xff] (!%p2414_p12) }
  0x8c   : > { %v1410_v25 = vpack.c.bf16 (!%p2414_p12), %v638_v22, %v636_v21  ;;  %v1412_v26 = vpack.c.bf16 (!%p2414_p12), %v643_v24, %v641_v23  ;;  %v640_v27 = vld [vmem:[#allocation5 + $0x80] sm:$0xff] (!%p2414_p12)  ;;  %v642_v28 = vld [vmem:[#allocation5 + $0x90] sm:$0xff] (!%p2414_p12)  ;;  %v645_v29 = vld [vmem:[#allocation5 + $0xa8] sm:$0xff] (!%p2414_p12) }
  0x8d   : > { %v647_v30 = vld [vmem:[#allocation5 + $0xb8] sm:$0xff] (!%p2414_p12)  ;;  %v1414_v31 = vpack.c.bf16 (!%p2414_p12), %v642_v28, %v640_v27  ;;  %v644_v33 = vld [vmem:[#allocation5 + $0xa0] sm:$0xff] (!%p2414_p12)  ;;  %v646_v34 = vld [vmem:[#allocation5 + $0xb0] sm:$0xff] (!%p2414_p12) }
  0x8e   : > { %1403 = vmatpush1.bf16.msra.mxu0 %v1402_v13  ;;  %v1416_v32 = vpack.c.bf16 %v647_v30, %v645_v29  ;;  %v649_v35 = vld [vmem:[#allocation5 + $0xc8] sm:$0xff]  ;;  %v651_v36 = vld [vmem:[#allocation5 + $0xd8] sm:$0xff]  ;;  %v1418_v37 = vpack.c.bf16 %v646_v34, %v644_v33  ;;  %v648_v39 = vld [vmem:[#allocation5 + $0xc0] sm:$0xff]  ;;  %v1762_v34 = vmov 1983009808  }
  0x8f   : > { %1405 = vmatprep.subr.bf16.mxu0 %v1404_v14  ;;  %v1420_v38 = vpack.c.bf16 %v651_v36, %v649_v35  ;;  %v650_v40 = vld [vmem:[#allocation5 + $0xd0] sm:$0xff]  ;;  %v653_v42 = vld [vmem:[#allocation5 + $0xe8] sm:$0xff]  ;;  %v655_v43 = vld [vmem:[#allocation5 + $0xf8] sm:$0xff]  ;;  %v774_v35 = vunpack.c.l.s4 %v1762_v34  ;;  %v776_v36 = vlaneseq }
  0x90   : > { %v2173_v41 = vld.sshfl [vmem:[%s2397_s1] sm:$0x33 pattern:$0x76325410]  ;;  %v1422_v45 = vpack.c.bf16 %v650_v40, %v648_v39  ;;  %v1424_v46 = vpack.c.bf16 %v655_v43, %v653_v42  ;;  %v652_v47 = vld [vmem:[#allocation5 + $0xe0] sm:$0xff]  ;;  %v657_v49 = vld [vmem:[#allocation5 + $0x108] sm:$0xff] }
  0x91   : > { %v696_v44 = vcombine.high %v2173_v41, %v2173_v41  ;;  %v654_v48 = vld [vmem:[#allocation5 + $0xf0] sm:$0xff]  ;;  %v659_v50 = vld [vmem:[#allocation5 + $0x118] sm:$0xff]  ;;  %v656_v53 = vld [vmem:[#allocation5 + $0x100] sm:$0xff] }
  0x92   : > { %1407 = vmatpush1.bf16.msra.mxu0 %v1406_v19  ;;  %v1426_v51 = vpack.c.bf16 %v654_v48, %v652_v47  ;;  %v1428_v52 = vpack.c.bf16 %v659_v50, %v657_v49  ;;  %v658_v54 = vld [vmem:[#allocation5 + $0x110] sm:$0xff]  ;;  %v661_v55 = vld [vmem:[#allocation5 + $0x128] sm:$0xff]  ;;  %v663_v56 = vld [vmem:[#allocation5 + $0x138] sm:$0xff] }
  0x93   : > { %1409 = vmatprep.subr.bf16.mxu0 %v1408_v20  ;;  %763 = vmatprep.mubr.f32.mxu0 %v696_v44  ;;  %v1430_v57 = vpack.c.bf16 %v658_v54, %v656_v53  ;;  %v1432_v58 = vpack.c.bf16 %v663_v56, %v661_v55  ;;  %v660_v59 = vld [vmem:[#allocation5 + $0x120] sm:$0xff]  ;;  %v662_v60 = vld [vmem:[#allocation5 + $0x130] sm:$0xff]  ;;  %v665_v61 = vld [vmem:[#allocation5 + $0x148] sm:$0xff] }
  0x94   : > { %v667_v62 = vld [vmem:[#allocation5 + $0x158] sm:$0xff]  ;;  %v1434_v63 = vpack.c.bf16 %v662_v60, %v660_v59  ;;  %v664_v1 = vld [vmem:[#allocation5 + $0x140] sm:$0xff]  ;;  %v666_v2 = vld [vmem:[#allocation5 + $0x150] sm:$0xff] }
  0x95   : > { %v1436_v0 = vpack.c.bf16 %v667_v62, %v665_v61  ;;  %v669_v3 = vld [vmem:[#allocation5 + $0x168] sm:$0xff]  ;;  %v671_v4 = vld [vmem:[#allocation5 + $0x178] sm:$0xff]  ;;  %v1438_v5 = vpack.c.bf16 %v666_v2, %v664_v1  ;;  %v668_v7 = vld [vmem:[#allocation5 + $0x160] sm:$0xff] }
  0x96   : > { %1411 = vmatpush1.bf16.msra.mxu0 %v1410_v25  ;;  %v1440_v6 = vpack.c.bf16 %v671_v4, %v669_v3  ;;  %v670_v8 = vld [vmem:[#allocation5 + $0x170] sm:$0xff]  ;;  %v673_v9 = vld [vmem:[#allocation5 + $0x188] sm:$0xff]  ;;  %v675_v10 = vld [vmem:[#allocation5 + $0x198] sm:$0xff] }
  0x97   : > { %1413 = vmatprep.subr.bf16.mxu0 %v1412_v26  ;;  %v1442_v11 = vpack.c.bf16 %v670_v8, %v668_v7  ;;  %v1444_v12 = vpack.c.bf16 %v675_v10, %v673_v9  ;;  %v672_v13 = vld [vmem:[#allocation5 + $0x180] sm:$0xff]  ;;  %v674_v14 = vld [vmem:[#allocation5 + $0x190] sm:$0xff]  ;;  %v677_v15 = vld [vmem:[#allocation5 + $0x1a8] sm:$0xff] }
  0x98   : > { %v679_v16 = vld [vmem:[#allocation5 + $0x1b8] sm:$0xff]  ;;  %v1446_v17 = vpack.c.bf16 %v674_v14, %v672_v13  ;;  %v676_v19 = vld [vmem:[#allocation5 + $0x1a0] sm:$0xff]  ;;  %v678_v20 = vld [vmem:[#allocation5 + $0x1b0] sm:$0xff] }
  0x99   : > { %v1448_v18 = vpack.c.bf16 %v679_v16, %v677_v15  ;;  %v681_v21 = vld [vmem:[#allocation5 + $0x1c8] sm:$0xff]  ;;  %v683_v22 = vld [vmem:[#allocation5 + $0x1d8] sm:$0xff]  ;;  %v1450_v23 = vpack.c.bf16 %v678_v20, %v676_v19  ;;  %v680_v25 = vld [vmem:[#allocation5 + $0x1c0] sm:$0xff] }
  0x9a   : > { %1415 = vmatpush1.bf16.msra.mxu0 %v1414_v31  ;;  %v1452_v24 = vpack.c.bf16 %v683_v22, %v681_v21  ;;  %v682_v26 = vld [vmem:[#allocation5 + $0x1d0] sm:$0xff]  ;;  %v685_v27 = vld [vmem:[#allocation5 + $0x1e8] sm:$0xff]  ;;  %v687_v28 = vld [vmem:[#allocation5 + $0x1f8] sm:$0xff] }
  0x9b   : > { %1417 = vmatprep.subr.bf16.mxu0 %v1416_v32  ;;  %v1454_v29 = vpack.c.bf16 %v682_v26, %v680_v25  ;;  %v1456_v30 = vpack.c.bf16 %v687_v28, %v685_v27  ;;  %v684_v31 = vld [vmem:[#allocation5 + $0x1e0] sm:$0xff]  ;;  %v686_v32 = vld [vmem:[#allocation5 + $0x1f0] sm:$0xff] }
  0x9c   : > { %v1458_v33 = vpack.c.bf16 %v686_v32, %v684_v31  ;;  %v622_v44 = vld [vmem:[%s2396_s0] sm:$0xf] }
  0x9d   : > { %v815_v60 = vld [vmem:[%s2399_s3] sm:$0x3] }
  0x9e   : > { %1419 = vmatpush1.bf16.msra.mxu0 %v1418_v37  ;;  %v775_v37 = vunpack.c.0.s8 %v774_v35 }
  0x9f   : > { %1421 = vmatprep.subr.bf16.mxu0 %v1420_v38  ;;  %v777_v38 = vshrl.u32 %v776_v36, 7 }
  0xa1   : > { %v778_v40 = vsub.s32 %v775_v37, %v777_v38  ;;  %v819_v56 = vsub.s32 0, %v777_v38 }
  0xa2   : > { %1423 = vmatpush1.bf16.msra.mxu0 %v1422_v45 }
  0xa3   : > { %1425 = vmatprep.subr.bf16.mxu0 %v1424_v46  ;;  %v820_v61 = vrot.slane %v815_v60, %v819_v56 }
  0xa6   : > { %1427 = vmatpush1.bf16.msra.mxu0 %v1426_v51 }
  0xa7   : > { %1429 = vmatprep.subr.bf16.mxu0 %v1428_v52  ;;  %v1763_v52 = vmov 0.0  }
  0xa8   : > { %836 = vst [vmem:[#allocation4] sm:$0xf] %v1763_v52 }
  0xaa   : > { %1431 = vmatpush1.bf16.msra.mxu0 %v1430_v57  ;;  %v823_v57 = vsub.s32 1, %v777_v38 }
  0xab   : > { %1433 = vmatprep.subr.bf16.mxu0 %v1432_v58  ;;  %v1764_v58 = vmov 269488144  }
  0xac   : > { %v807_v59 = vunpack.c.l.s4 %v1764_v58  ;;  %v824_v62 = vrot.slane %v815_v60, %v823_v57 }
  0xae   : > { %1435 = vmatpush1.bf16.msra.mxu0 %v1434_v63  ;;  %v808_v63 = vunpack.c.0.s8 %v807_v59 }
  0xaf   : > { %1437 = vmatprep.subr.bf16.mxu0 %v1436_v0  ;;  %v825_v0 = vcombine.low %v820_v61, %v824_v62 }
  0xb0   : > { %v811_v1 = vsub.s32 %v808_v63, %v777_v38 }
  0xb1   : > { %v832_v3 = vrot.slane %v825_v0, %v778_v40 }
  0xb2   : > { %1439 = vmatpush1.bf16.msra.mxu0 %v1438_v5 }
  0xb3   : > { %1441 = vmatprep.subr.bf16.mxu0 %v1440_v6 }
  0xb6   : > { %1443 = vmatpush1.bf16.msra.mxu0 %v1442_v11 }
  0xb7   : > { %1445 = vmatprep.subr.bf16.mxu0 %v1444_v12 }
  0xba   : > { %1447 = vmatpush1.bf16.msra.mxu0 %v1446_v17 }
  0xbb   : > { %1449 = vmatprep.subr.bf16.mxu0 %v1448_v18 }
  0xbe   : > { %1451 = vmatpush1.bf16.msra.mxu0 %v1450_v23 }
  0xbf   : > { %1453 = vmatprep.subr.bf16.mxu0 %v1452_v24 }
  0xc2   : > { %1455 = vmatpush1.bf16.msra.mxu0 %v1454_v29 }
  0xc3   : > { %1457 = vmatprep.subr.bf16.mxu0 %v1456_v30 }
  0xc6   : > { %1459 = vmatpush1.bf16.msra.mxu0 %v1458_v33 }
  0xc9   : > { %764 = vmatmul.mubr.f32.vlgmr.msra.gmra.mrb[0].mxu0 %v2173_v41 }
 0x19c   : > { %v765_v39 = vpop.f32.mrb[0].mxu0 }
 0x19d   : > { %v767_v42 = vpop.f32.mrb[1].mxu0 }
 0x19e   : > { %v772_v43 = vcombine.low %v765_v39, %v767_v42 }
 0x1a0   : > { %v779_v45 = vrot.slane %v772_v43, %v778_v40 }
 0x1a2   : > { %v781_v46 = vadd.f32 %v779_v45, %v622_v44 }
 0x1a4   : > { %782 = vst [vmem:[#allocation2] sm:$0xf] %v781_v46  ;;  %v783_v47 = vmul.f32 %v781_v46, %v781_v46 }
 0x1a6   : > { %v791_v48 = vrot.slane %v783_v47, %v778_v40 }
 0x1a8   : > { %v792_v41 = vcombine.high %v791_v48, %v791_v48  ;;  %v796_v49 = vsel %vm795_vm0, %v791_v48, 0.0 }
 0x1aa   : > { %v797_v50 = vsel %vm795_vm0, %v792_v41, 0.0 }
 0x1ab   : > { %v798_v51 = vadd.f32 %v797_v50, %v796_v49 }
 0x1ad   : > { %799 = vadd.xlane.f32.xlu0 %v798_v51 }
 0x23a   : > { %v800_v53 = vpop.xlane.xlu0 %799 }
 0x23b   : > { %v802_v54 = vmul.f32 0.00390625, %v800_v53 }
 0x23d   : > { %v803_v55 = vadd.f32 1e-05, %v802_v54 }
 0x23f   : > { %1693 = vrsqrt.f32 %v803_v55 }
 0x249   : > { %v1694_v2 = vpop.eup %1693 }
 0x24a   : > { %v812_v4 = vrot.slane %v1694_v2, %v811_v1 }
 0x24c   : > { %v814_v5 = vmul.f32 %v812_v4, %v781_v46 }
 0x24e   : > { %v834_v6 = vmul.f32 %v832_v3, %v814_v5 }
 0x250   : > { %835 = vst [vmem:[#allocation3] sm:$0xf] %v834_v6 }
 0x251 PF: > { %v839_v7 = vld [vmem:[%s2164_s10 + $0x8] sm:$0xff]  ;;  %v841_v8 = vld [vmem:[%s2164_s10 + $0x18] sm:$0xff]  ;;  %v838_v9 = vld [vmem:[%s2164_s10] sm:$0xff]  ;;  %p1390_p0 = scmp.ne.s32.totalorder %s1822_s27, 2 }
 0x252   : > { %v1460_v10 = vpack.c.bf16 %v841_v8, %v839_v7  ;;  %v840_v11 = vld [vmem:[%s2164_s10 + $0x10] sm:$0xff]  ;;  %v843_v12 = vld [vmem:[%s2164_s10 + $0x28] sm:$0xff]  ;;  %v845_v13 = vld [vmem:[%s2164_s10 + $0x38] sm:$0xff] }
 0x253   : > { %v1462_v14 = vpack.c.bf16 %v840_v11, %v838_v9  ;;  %v1464_v15 = vpack.c.bf16 %v845_v13, %v843_v12  ;;  %v842_v16 = vld [vmem:[%s2164_s10 + $0x20] sm:$0xff]  ;;  %v844_v17 = vld [vmem:[%s2164_s10 + $0x30] sm:$0xff]  ;;  %v847_v18 = vld [vmem:[%s2164_s10 + $0x48] sm:$0xff] }
 0x254   : > { %1461 = vmatprep.subr.bf16.mxu0 %v1460_v10  ;;  %v849_v19 = vld [vmem:[%s2164_s10 + $0x58] sm:$0xff]  ;;  %v1466_v20 = vpack.c.bf16 %v844_v17, %v842_v16  ;;  %v846_v22 = vld [vmem:[%s2164_s10 + $0x40] sm:$0xff]  ;;  %v848_v23 = vld [vmem:[%s2164_s10 + $0x50] sm:$0xff] }
 0x255   : > { %1463 = vmatpush1.bf16.msra.mxu0 %v1462_v14  ;;  %v1468_v21 = vpack.c.bf16 %v849_v19, %v847_v18  ;;  %v851_v24 = vld [vmem:[%s2164_s10 + $0x68] sm:$0xff]  ;;  %v853_v25 = vld [vmem:[%s2164_s10 + $0x78] sm:$0xff]  ;;  %v1470_v26 = vpack.c.bf16 %v848_v23, %v846_v22  ;;  %v850_v27 = vld [vmem:[%s2164_s10 + $0x60] sm:$0xff] }
 0x256   : > { %1465 = vmatprep.subr.bf16.mxu0 %v1464_v15  ;;  %v1472_v28 = vpack.c.bf16 %v853_v25, %v851_v24  ;;  %v852_v29 = vld [vmem:[%s2164_s10 + $0x70] sm:$0xff]  ;;  %v999_v30 = vld [vmem:[%s2166_s17 + $0x8] sm:$0xff]  ;;  %v1001_v31 = vld [vmem:[%s2166_s17 + $0x18] sm:$0xff] }
 0x257   : > { %v855_v32 = vld [vmem:[%s2164_s10 + $0x88] sm:$0xff]  ;;  %v857_v33 = vld [vmem:[%s2164_s10 + $0x98] sm:$0xff]  ;;  %v1524_v34 = vpack.c.bf16 %v1001_v31, %v999_v30  ;;  %v998_v35 = vld [vmem:[%s2166_s17] sm:$0xff]  ;;  %v1474_v37 = vpack.c.bf16 %v852_v29, %v850_v27 }
 0x258   : > { %v1000_v36 = vld [vmem:[%s2166_s17 + $0x10] sm:$0xff]  ;;  %v854_v38 = vld [vmem:[%s2164_s10 + $0x80] sm:$0xff]  ;;  %v1003_v40 = vld [vmem:[%s2166_s17 + $0x28] sm:$0xff]  ;;  %v1476_v43 = vpack.c.bf16 %v857_v33, %v855_v32 }
 0x259   : > { %1467 = vmatpush1.bf16.msra.mxu0 %v1466_v20  ;;  %1525 = vmatprep.subr.bf16.mxu1 %v1524_v34  ;;  %v1526_v39 = vpack.c.bf16 %v1000_v36, %v998_v35  ;;  %v1005_v42 = vld [vmem:[%s2166_s17 + $0x38] sm:$0xff]  ;;  %v856_v44 = vld [vmem:[%s2164_s10 + $0x90] sm:$0xff]  ;;  %v1002_v46 = vld [vmem:[%s2166_s17 + $0x20] sm:$0xff] }
 0x25a   : > { %1469 = vmatprep.subr.bf16.mxu0 %v1468_v21  ;;  %v1528_v45 = vpack.c.bf16 %v1005_v42, %v1003_v40  ;;  %v1004_v47 = vld [vmem:[%s2166_s17 + $0x30] sm:$0xff]  ;;  %v859_v48 = vld [vmem:[%s2164_s10 + $0xa8] sm:$0xff]  ;;  %v861_v41 = vld [vmem:[%s2164_s10 + $0xb8] sm:$0xff]  ;;  %v1478_v52 = vpack.c.bf16 %v856_v44, %v854_v38 }
 0x25b   : > { %1527 = vmatpush1.bf16.msra.mxu1 %v1526_v39  ;;  %v1530_v49 = vpack.c.bf16 %v1004_v47, %v1002_v46  ;;  %v1007_v50 = vld [vmem:[%s2166_s17 + $0x48] sm:$0xff]  ;;  %v1009_v51 = vld [vmem:[%s2166_s17 + $0x58] sm:$0xff]  ;;  %v858_v53 = vld [vmem:[%s2164_s10 + $0xa0] sm:$0xff]  ;;  %v1480_v57 = vpack.c.bf16 %v861_v41, %v859_v48 }
 0x25c   : > { %1529 = vmatprep.subr.bf16.mxu1 %v1528_v45  ;;  %v1532_v54 = vpack.c.bf16 %v1009_v51, %v1007_v50  ;;  %v1006_v55 = vld [vmem:[%s2166_s17 + $0x40] sm:$0xff]  ;;  %v1008_v56 = vld [vmem:[%s2166_s17 + $0x50] sm:$0xff]  ;;  %v1011_v59 = vld [vmem:[%s2166_s17 + $0x68] sm:$0xff] }
 0x25d   : > { %1471 = vmatpush1.bf16.msra.mxu0 %v1470_v26  ;;  %v860_v58 = vld [vmem:[%s2164_s10 + $0xb0] sm:$0xff]  ;;  %v1013_v60 = vld [vmem:[%s2166_s17 + $0x78] sm:$0xff]  ;;  %v863_v61 = vld [vmem:[%s2164_s10 + $0xc8] sm:$0xff]  ;;  %v1534_v63 = vpack.c.bf16 %v1008_v56, %v1006_v55 }
 0x25e   : > { %1473 = vmatprep.subr.bf16.mxu0 %v1472_v28  ;;  %v865_v62 = vld [vmem:[%s2164_s10 + $0xd8] sm:$0xff]  ;;  %v1536_v0 = vpack.c.bf16 %v1013_v60, %v1011_v59  ;;  %v1010_v1 = vld [vmem:[%s2166_s17 + $0x60] sm:$0xff]  ;;  %v1012_v2 = vld [vmem:[%s2166_s17 + $0x70] sm:$0xff]  ;;  %v1482_v3 = vpack.c.bf16 %v860_v58, %v858_v53 }
 0x25f   : > { %1531 = vmatpush1.bf16.msra.mxu1 %v1530_v49  ;;  %v1015_v4 = vld [vmem:[%s2166_s17 + $0x88] sm:$0xff]  ;;  %v1017_v5 = vld [vmem:[%s2166_s17 + $0x98] sm:$0xff]  ;;  %v1484_v6 = vpack.c.bf16 %v865_v62, %v863_v61  ;;  %v862_v7 = vld [vmem:[%s2164_s10 + $0xc0] sm:$0xff]  ;;  %v1538_v11 = vpack.c.bf16 %v1012_v2, %v1010_v1 }
 0x260   : > { %1533 = vmatprep.subr.bf16.mxu1 %v1532_v54  ;;  %v864_v8 = vld [vmem:[%s2164_s10 + $0xd0] sm:$0xff]  ;;  %v867_v9 = vld [vmem:[%s2164_s10 + $0xe8] sm:$0xff]  ;;  %v869_v10 = vld [vmem:[%s2164_s10 + $0xf8] sm:$0xff]  ;;  %v1540_v12 = vpack.c.bf16 %v1017_v5, %v1015_v4 }
 0x261   : > { %1475 = vmatpush1.bf16.msra.mxu0 %v1474_v37  ;;  %v1014_v13 = vld [vmem:[%s2166_s17 + $0x80] sm:$0xff]  ;;  %v1016_v14 = vld [vmem:[%s2166_s17 + $0x90] sm:$0xff]  ;;  %v1486_v15 = vpack.c.bf16 %v864_v8, %v862_v7  ;;  %v1019_v16 = vld [vmem:[%s2166_s17 + $0xa8] sm:$0xff]  ;;  %v1488_v18 = vpack.c.bf16 %v869_v10, %v867_v9 }
 0x262   : > { %1477 = vmatprep.subr.bf16.mxu0 %v1476_v43  ;;  %v1021_v17 = vld [vmem:[%s2166_s17 + $0xb8] sm:$0xff]  ;;  %v866_v19 = vld [vmem:[%s2164_s10 + $0xe0] sm:$0xff]  ;;  %v868_v20 = vld [vmem:[%s2164_s10 + $0xf0] sm:$0xff]  ;;  %v1542_v23 = vpack.c.bf16 %v1016_v14, %v1014_v13 }
 0x263   : > { %1535 = vmatpush1.bf16.msra.mxu1 %v1534_v63  ;;  %v871_v21 = vld [vmem:[%s2164_s10 + $0x108] sm:$0xff]  ;;  %v873_v22 = vld [vmem:[%s2164_s10 + $0x118] sm:$0xff]  ;;  %v1544_v24 = vpack.c.bf16 %v1021_v17, %v1019_v16  ;;  %v1018_v25 = vld [vmem:[%s2166_s17 + $0xa0] sm:$0xff]  ;;  %v1490_v27 = vpack.c.bf16 %v868_v20, %v866_v19 }
 0x264   : > { %1537 = vmatprep.subr.bf16.mxu1 %v1536_v0  ;;  %v1020_v26 = vld [vmem:[%s2166_s17 + $0xb0] sm:$0xff]  ;;  %v1023_v28 = vld [vmem:[%s2166_s17 + $0xc8] sm:$0xff]  ;;  %v1025_v29 = vld [vmem:[%s2166_s17 + $0xd8] sm:$0xff]  ;;  %v1492_v30 = vpack.c.bf16 %v873_v22, %v871_v21 }
 0x265   : > { %1479 = vmatpush1.bf16.msra.mxu0 %v1478_v52  ;;  %v870_v31 = vld [vmem:[%s2164_s10 + $0x100] sm:$0xff]  ;;  %v872_v32 = vld [vmem:[%s2164_s10 + $0x110] sm:$0xff]  ;;  %v875_v33 = vld [vmem:[%s2164_s10 + $0x128] sm:$0xff]  ;;  %v1546_v35 = vpack.c.bf16 %v1020_v26, %v1018_v25  ;;  %v1548_v36 = vpack.c.bf16 %v1025_v29, %v1023_v28 }
 0x266   : > { %1481 = vmatprep.subr.bf16.mxu0 %v1480_v57  ;;  %v877_v34 = vld [vmem:[%s2164_s10 + $0x138] sm:$0xff]  ;;  %v1022_v37 = vld [vmem:[%s2166_s17 + $0xc0] sm:$0xff]  ;;  %v1024_v38 = vld [vmem:[%s2166_s17 + $0xd0] sm:$0xff]  ;;  %v1494_v39 = vpack.c.bf16 %v872_v32, %v870_v31 }
 0x267   : > { %1539 = vmatpush1.bf16.msra.mxu1 %v1538_v11  ;;  %v1027_v40 = vld [vmem:[%s2166_s17 + $0xe8] sm:$0xff]  ;;  %v1029_v42 = vld [vmem:[%s2166_s17 + $0xf8] sm:$0xff]  ;;  %v1496_v43 = vpack.c.bf16 %v877_v34, %v875_v33  ;;  %v874_v44 = vld [vmem:[%s2164_s10 + $0x120] sm:$0xff]  ;;  %v1550_v41 = vpack.c.bf16 %v1024_v38, %v1022_v37 }
 0x268   : > { %1541 = vmatprep.subr.bf16.mxu1 %v1540_v12  ;;  %v876_v45 = vld [vmem:[%s2164_s10 + $0x130] sm:$0xff]  ;;  %v2254_v46 = vld.sshfl [vmem:[#allocation3] sm:$0x33 pattern:$0x76325410]  ;;  %v879_v47 = vld [vmem:[%s2164_s10 + $0x148] sm:$0xff]  ;;  %v1552_v50 = vpack.c.bf16 %v1029_v42, %v1027_v40 }
 0x269   : > { %1483 = vmatpush1.bf16.msra.mxu0 %v1482_v3  ;;  %v881_v48 = vld [vmem:[%s2164_s10 + $0x158] sm:$0xff]  ;;  %v910_v49 = vcombine.high %v2254_v46, %v2254_v46  ;;  %v1026_v51 = vld [vmem:[%s2166_s17 + $0xe0] sm:$0xff]  ;;  %v1028_v52 = vld [vmem:[%s2166_s17 + $0xf0] sm:$0xff]  ;;  %v1498_v53 = vpack.c.bf16 %v876_v45, %v874_v44 }
 0x26a   : > { %1485 = vmatprep.subr.bf16.mxu0 %v1484_v6  ;;  %v1031_v54 = vld [vmem:[%s2166_s17 + $0x108] sm:$0xff]  ;;  %v1033_v55 = vld [vmem:[%s2166_s17 + $0x118] sm:$0xff]  ;;  %v1500_v56 = vpack.c.bf16 %v881_v48, %v879_v47  ;;  %v878_v57 = vld [vmem:[%s2164_s10 + $0x140] sm:$0xff]  ;;  %v1554_v61 = vpack.c.bf16 %v1028_v52, %v1026_v51 }
 0x26b   : > { %1543 = vmatpush1.bf16.msra.mxu1 %v1542_v23  ;;  %977 = vmatprep.mubr.f32.mxu0 %v910_v49  ;;  %v880_v58 = vld [vmem:[%s2164_s10 + $0x150] sm:$0xff]  ;;  %v883_v59 = vld [vmem:[%s2164_s10 + $0x168] sm:$0xff]  ;;  %v885_v60 = vld [vmem:[%s2164_s10 + $0x178] sm:$0xff]  ;;  %v1556_v62 = vpack.c.bf16 %v1033_v55, %v1031_v54 }
 0x26c   : > { %1545 = vmatprep.subr.bf16.mxu1 %v1544_v24  ;;  %1126 = vmatprep.mubr.f32.mxu1 %v910_v49  ;;  %v1030_v63 = vld [vmem:[%s2166_s17 + $0x100] sm:$0xff]  ;;  %v1032_v0 = vld [vmem:[%s2166_s17 + $0x110] sm:$0xff]  ;;  %v1502_v1 = vpack.c.bf16 %v880_v58, %v878_v57  ;;  %v1035_v2 = vld [vmem:[%s2166_s17 + $0x128] sm:$0xff]  ;;  %v1504_v4 = vpack.c.bf16 %v885_v60, %v883_v59 }
 0x26d   : > { %1487 = vmatpush1.bf16.msra.mxu0 %v1486_v15  ;;  %v1037_v3 = vld [vmem:[%s2166_s17 + $0x138] sm:$0xff]  ;;  %v882_v5 = vld [vmem:[%s2164_s10 + $0x160] sm:$0xff]  ;;  %v884_v6 = vld [vmem:[%s2164_s10 + $0x170] sm:$0xff]  ;;  %v1558_v9 = vpack.c.bf16 %v1032_v0, %v1030_v63 }
 0x26e   : > { %1489 = vmatprep.subr.bf16.mxu0 %v1488_v18  ;;  %v887_v7 = vld [vmem:[%s2164_s10 + $0x188] sm:$0xff]  ;;  %v889_v8 = vld [vmem:[%s2164_s10 + $0x198] sm:$0xff]  ;;  %v1560_v10 = vpack.c.bf16 %v1037_v3, %v1035_v2  ;;  %v1034_v11 = vld [vmem:[%s2166_s17 + $0x120] sm:$0xff]  ;;  %v1506_v13 = vpack.c.bf16 %v884_v6, %v882_v5 }
 0x26f   : > { %1547 = vmatpush1.bf16.msra.mxu1 %v1546_v35  ;;  %v1036_v12 = vld [vmem:[%s2166_s17 + $0x130] sm:$0xff]  ;;  %v1039_v14 = vld [vmem:[%s2166_s17 + $0x148] sm:$0xff]  ;;  %v1041_v15 = vld [vmem:[%s2166_s17 + $0x158] sm:$0xff]  ;;  %v1508_v16 = vpack.c.bf16 %v889_v8, %v887_v7 }
 0x270   : > { %1549 = vmatprep.subr.bf16.mxu1 %v1548_v36  ;;  %v886_v17 = vld [vmem:[%s2164_s10 + $0x180] sm:$0xff]  ;;  %v888_v18 = vld [vmem:[%s2164_s10 + $0x190] sm:$0xff]  ;;  %v891_v19 = vld [vmem:[%s2164_s10 + $0x1a8] sm:$0xff]  ;;  %v1562_v21 = vpack.c.bf16 %v1036_v12, %v1034_v11  ;;  %v1564_v22 = vpack.c.bf16 %v1041_v15, %v1039_v14 }
 0x271   : > { %1491 = vmatpush1.bf16.msra.mxu0 %v1490_v27  ;;  %v893_v20 = vld [vmem:[%s2164_s10 + $0x1b8] sm:$0xff]  ;;  %v1038_v23 = vld [vmem:[%s2166_s17 + $0x140] sm:$0xff]  ;;  %v1040_v24 = vld [vmem:[%s2166_s17 + $0x150] sm:$0xff]  ;;  %v1510_v25 = vpack.c.bf16 %v888_v18, %v886_v17 }
 0x272   : > { %1493 = vmatprep.subr.bf16.mxu0 %v1492_v30  ;;  %v1043_v26 = vld [vmem:[%s2166_s17 + $0x168] sm:$0xff]  ;;  %v1045_v27 = vld [vmem:[%s2166_s17 + $0x178] sm:$0xff]  ;;  %v1512_v28 = vpack.c.bf16 %v893_v20, %v891_v19  ;;  %v890_v29 = vld [vmem:[%s2164_s10 + $0x1a0] sm:$0xff]  ;;  %v1566_v33 = vpack.c.bf16 %v1040_v24, %v1038_v23 }
 0x273   : > { %1551 = vmatpush1.bf16.msra.mxu1 %v1550_v41  ;;  %v892_v30 = vld [vmem:[%s2164_s10 + $0x1b0] sm:$0xff]  ;;  %v895_v31 = vld [vmem:[%s2164_s10 + $0x1c8] sm:$0xff]  ;;  %v897_v32 = vld [vmem:[%s2164_s10 + $0x1d8] sm:$0xff]  ;;  %v1568_v34 = vpack.c.bf16 %v1045_v27, %v1043_v26 }
 0x274   : > { %1553 = vmatprep.subr.bf16.mxu1 %v1552_v50  ;;  %v1042_v35 = vld [vmem:[%s2166_s17 + $0x160] sm:$0xff]  ;;  %v1044_v36 = vld [vmem:[%s2166_s17 + $0x170] sm:$0xff]  ;;  %v1514_v37 = vpack.c.bf16 %v892_v30, %v890_v29  ;;  %v1047_v38 = vld [vmem:[%s2166_s17 + $0x188] sm:$0xff]  ;;  %v1516_v40 = vpack.c.bf16 %v897_v32, %v895_v31 }
 0x275   : > { %1495 = vmatpush1.bf16.msra.mxu0 %v1494_v39  ;;  %v1049_v39 = vld [vmem:[%s2166_s17 + $0x198] sm:$0xff]  ;;  %v894_v42 = vld [vmem:[%s2164_s10 + $0x1c0] sm:$0xff]  ;;  %v899_v44 = vld [vmem:[%s2164_s10 + $0x1e8] sm:$0xff]  ;;  %v1570_v47 = vpack.c.bf16 %v1044_v36, %v1042_v35 }
 0x276   : > { %1497 = vmatprep.subr.bf16.mxu0 %v1496_v43  ;;  %v896_v43 = vld [vmem:[%s2164_s10 + $0x1d0] sm:$0xff]  ;;  %v901_v45 = vld [vmem:[%s2164_s10 + $0x1f8] sm:$0xff]  ;;  %v1572_v48 = vpack.c.bf16 %v1049_v39, %v1047_v38  ;;  %v1046_v41 = vld [vmem:[%s2166_s17 + $0x180] sm:$0xff] }
 0x277   : > { %1555 = vmatpush1.bf16.msra.mxu1 %v1554_v61  ;;  %v1048_v49 = vld [vmem:[%s2166_s17 + $0x190] sm:$0xff]  ;;  %v1518_v50 = vpack.c.bf16 %v896_v43, %v894_v42  ;;  %v1051_v51 = vld [vmem:[%s2166_s17 + $0x1a8] sm:$0xff]  ;;  %v1053_v52 = vld [vmem:[%s2166_s17 + $0x1b8] sm:$0xff] }
 0x278   : > { %1557 = vmatprep.subr.bf16.mxu1 %v1556_v62  ;;  %v898_v54 = vld [vmem:[%s2164_s10 + $0x1e0] sm:$0xff]  ;;  %v900_v55 = vld [vmem:[%s2164_s10 + $0x1f0] sm:$0xff]  ;;  %v1576_v59 = vpack.c.bf16 %v1053_v52, %v1051_v51  ;;  %v1055_v63 = vld [vmem:[%s2166_s17 + $0x1c8] sm:$0xff] }
 0x279   : > { %1499 = vmatpush1.bf16.msra.mxu0 %v1498_v53  ;;  %v1520_v53 = vpack.c.bf16 %v901_v45, %v899_v44  ;;  %v1137_v57 = vld [vmem:[%s2162_s16 + $0x8] sm:$0xff]  ;;  %v1139_v58 = vld [vmem:[%s2162_s16 + $0x18] sm:$0xff]  ;;  %v1522_v62 = vpack.c.bf16 %v900_v55, %v898_v54  ;;  %v1136_v2 = vld [vmem:[%s2162_s16] sm:$0xff] }
 0x27a   : > { %1501 = vmatprep.subr.bf16.mxu0 %v1500_v56  ;;  %v1574_v56 = vpack.c.bf16 %v1048_v49, %v1046_v41  ;;  %v1050_v60 = vld [vmem:[%s2166_s17 + $0x1a0] sm:$0xff]  ;;  %v1052_v61 = vld [vmem:[%s2166_s17 + $0x1b0] sm:$0xff]  ;;  %v1057_v0 = vld [vmem:[%s2166_s17 + $0x1d8] sm:$0xff] }
 0x27b   : > { %1559 = vmatpush1.bf16.msra.mxu1 %v1558_v9  ;;  %v1138_v3 = vld [vmem:[%s2162_s16 + $0x10] sm:$0xff]  ;;  %v1141_v5 = vld [vmem:[%s2162_s16 + $0x28] sm:$0xff]  ;;  %v1143_v6 = vld [vmem:[%s2162_s16 + $0x38] sm:$0xff]  ;;  %v1580_v7 = vpack.c.bf16 %v1057_v0, %v1055_v63 }
 0x27c   : > { %1561 = vmatprep.subr.bf16.mxu1 %v1560_v10  ;;  %v1054_v8 = vld [vmem:[%s2166_s17 + $0x1c0] sm:$0xff]  ;;  %v1056_v9 = vld [vmem:[%s2166_s17 + $0x1d0] sm:$0xff]  ;;  %v1059_v10 = vld [vmem:[%s2166_s17 + $0x1e8] sm:$0xff]  ;;  %v1590_v12 = vpack.c.bf16 %v1138_v3, %v1136_v2 }
 0x27d   : > { %1503 = vmatpush1.bf16.msra.mxu0 %v1502_v1  ;;  %v1588_v1 = vpack.c.bf16 %v1139_v58, %v1137_v57  ;;  %v1061_v11 = vld [vmem:[%s2166_s17 + $0x1f8] sm:$0xff]  ;;  %v1142_v15 = vld [vmem:[%s2162_s16 + $0x30] sm:$0xff]  ;;  %v1147_v18 = vld [vmem:[%s2162_s16 + $0x58] sm:$0xff] }
 0x27e   : > { %1505 = vmatprep.subr.bf16.mxu0 %v1504_v4  ;;  %v1578_v4 = vpack.c.bf16 %v1052_v61, %v1050_v60  ;;  %v1140_v14 = vld [vmem:[%s2162_s16 + $0x20] sm:$0xff]  ;;  %v1145_v17 = vld [vmem:[%s2162_s16 + $0x48] sm:$0xff]  ;;  %v1584_v19 = vpack.c.bf16 %v1061_v11, %v1059_v10  ;;  %v1150_v32 = vld [vmem:[%s2162_s16 + $0x70] sm:$0xff] }
 0x27f   : > { %1563 = vmatpush1.bf16.msra.mxu1 %v1562_v21  ;;  %v1058_v20 = vld [vmem:[%s2166_s17 + $0x1e0] sm:$0xff]  ;;  %v1060_v21 = vld [vmem:[%s2166_s17 + $0x1f0] sm:$0xff]  ;;  %v1596_v23 = vpack.c.bf16 %v1147_v18, %v1145_v17 }
 0x280   : > { %1565 = vmatprep.subr.bf16.mxu1 %v1564_v22  ;;  %v1594_v22 = vpack.c.bf16 %v1142_v15, %v1140_v14  ;;  %v1144_v24 = vld [vmem:[%s2162_s16 + $0x40] sm:$0xff]  ;;  %v1586_v26 = vpack.c.bf16 %v1060_v21, %v1058_v20  ;;  %v1149_v27 = vld [vmem:[%s2162_s16 + $0x68] sm:$0xff]  ;;  %v1154_v38 = vld [vmem:[%s2162_s16 + $0x90] sm:$0xff] }
 0x281   : > { %1507 = vmatpush1.bf16.msra.mxu0 %v1506_v13  ;;  %v1592_v13 = vpack.c.bf16 %v1143_v6, %v1141_v5  ;;  %v1148_v31 = vld [vmem:[%s2162_s16 + $0x60] sm:$0xff]  ;;  %v1157_v39 = vld [vmem:[%s2162_s16 + $0xa8] sm:$0xff]  ;;  %v1158_v45 = vld [vmem:[%s2162_s16 + $0xb0] sm:$0xff] }
 0x282   : > { %1509 = vmatprep.subr.bf16.mxu0 %v1508_v16  ;;  %v1582_v16 = vpack.c.bf16 %v1056_v9, %v1054_v8  ;;  %v1602_v35 = vpack.c.bf16 %v1150_v32, %v1148_v31  ;;  %v1156_v44 = vld [vmem:[%s2162_s16 + $0xa0] sm:$0xff]  ;;  %v1165_v51 = vld [vmem:[%s2162_s16 + $0xe8] sm:$0xff]  ;;  %v1167_v52 = vld [vmem:[%s2162_s16 + $0xf8] sm:$0xff] }
 0x283   : > { %1567 = vmatpush1.bf16.msra.mxu1 %v1566_v33  ;;  %v1153_v33 = vld [vmem:[%s2162_s16 + $0x88] sm:$0xff]  ;;  %v1160_v49 = vld [vmem:[%s2162_s16 + $0xc0] sm:$0xff]  ;;  %v1616_v54 = vpack.c.bf16 %v1167_v52, %v1165_v51  ;;  %v1178_v10 = vld [vmem:[%s2162_s16 + $0x150] sm:$0xff] }
 0x284   : > { %1569 = vmatprep.subr.bf16.mxu1 %v1568_v34  ;;  %v1155_v34 = vld [vmem:[%s2162_s16 + $0x98] sm:$0xff]  ;;  %v1164_v55 = vld [vmem:[%s2162_s16 + $0xe0] sm:$0xff]  ;;  %v1169_v58 = vld [vmem:[%s2162_s16 + $0x108] sm:$0xff] }
 0x285   : > { %1511 = vmatpush1.bf16.msra.mxu0 %v1510_v25  ;;  %v1146_v25 = vld [vmem:[%s2162_s16 + $0x50] sm:$0xff]  ;;  %v1604_v36 = vpack.c.bf16 %v1155_v34, %v1153_v33  ;;  %v1168_v61 = vld [vmem:[%s2162_s16 + $0x100] sm:$0xff]  ;;  %v1173_v0 = vld [vmem:[%s2162_s16 + $0x128] sm:$0xff] }
 0x286   : > { %1513 = vmatprep.subr.bf16.mxu0 %v1512_v28  ;;  %v1151_v28 = vld [vmem:[%s2162_s16 + $0x78] sm:$0xff]  ;;  %v1598_v29 = vpack.c.bf16 %v1146_v25, %v1144_v24  ;;  %v1172_v3 = vld [vmem:[%s2162_s16 + $0x120] sm:$0xff]  ;;  %v1177_v6 = vld [vmem:[%s2162_s16 + $0x148] sm:$0xff] }
 0x287   : > { %1571 = vmatpush1.bf16.msra.mxu1 %v1570_v47  ;;  %v1600_v30 = vpack.c.bf16 %v1151_v28, %v1149_v27  ;;  %v1161_v47 = vld [vmem:[%s2162_s16 + $0xc8] sm:$0xff]  ;;  %v1176_v9 = vld [vmem:[%s2162_s16 + $0x140] sm:$0xff]  ;;  %v1191_v25 = vld [vmem:[%s2162_s16 + $0x1b8] sm:$0xff] }
 0x288   : > { %1573 = vmatprep.subr.bf16.mxu1 %v1572_v48  ;;  %v1610_v48 = vpack.c.bf16 %v1158_v45, %v1156_v44  ;;  %v1630_v11 = vpack.c.bf16 %v1178_v10, %v1176_v9  ;;  %v1180_v15 = vld [vmem:[%s2162_s16 + $0x160] sm:$0xff]  ;;  %v1185_v18 = vld [vmem:[%s2162_s16 + $0x188] sm:$0xff]  ;;  %v1190_v28 = vld [vmem:[%s2162_s16 + $0x1b0] sm:$0xff] }
 0x289   : > { %1515 = vmatpush1.bf16.msra.mxu0 %v1514_v37  ;;  %v1152_v37 = vld [vmem:[%s2162_s16 + $0x80] sm:$0xff]  ;;  %v1189_v24 = vld [vmem:[%s2162_s16 + $0x1a8] sm:$0xff]  ;;  %v1195_v31 = vld [vmem:[%s2162_s16 + $0x1d8] sm:$0xff] }
 0x28a   : > { %1517 = vmatprep.subr.bf16.mxu0 %v1516_v40  ;;  %v1159_v40 = vld [vmem:[%s2162_s16 + $0xb8] sm:$0xff]  ;;  %v1606_v42 = vpack.c.bf16 %v1154_v38, %v1152_v37  ;;  %v1184_v21 = vld [vmem:[%s2162_s16 + $0x180] sm:$0xff]  ;;  %v1194_v34 = vld [vmem:[%s2162_s16 + $0x1d0] sm:$0xff] }
 0x28b   : > { %1575 = vmatpush1.bf16.msra.mxu1 %v1574_v56  ;;  %v1608_v43 = vpack.c.bf16 %v1159_v40, %v1157_v39  ;;  %v1166_v56 = vld [vmem:[%s2162_s16 + $0xf0] sm:$0xff]  ;;  %v1188_v27 = vld [vmem:[%s2162_s16 + $0x1a0] sm:$0xff]  ;;  %v1199_v37 = vld [vmem:[%s2162_s16 + $0x1f8] sm:$0xff] }
 0x28c   : > { %1577 = vmatprep.subr.bf16.mxu1 %v1576_v59  ;;  %v1618_v57 = vpack.c.bf16 %v1166_v56, %v1164_v55  ;;  %v1171_v59 = vld [vmem:[%s2162_s16 + $0x118] sm:$0xff]  ;;  %v1192_v33 = vld [vmem:[%s2162_s16 + $0x1c0] sm:$0xff]  ;;  %v1198_v40 = vld [vmem:[%s2162_s16 + $0x1f0] sm:$0xff] }
 0x28d   : > { %1519 = vmatpush1.bf16.msra.mxu0 %v1518_v50  ;;  %v1162_v50 = vld [vmem:[%s2162_s16 + $0xd0] sm:$0xff]  ;;  %v1620_v60 = vpack.c.bf16 %v1171_v59, %v1169_v58  ;;  %v1196_v39 = vld [vmem:[%s2162_s16 + $0x1e0] sm:$0xff]  ;;  %v1765_v58 = vmov 1983009808  }
 0x28e   : > { %1521 = vmatprep.subr.bf16.mxu0 %v1520_v53  ;;  %v1614_v53 = vpack.c.bf16 %v1162_v50, %v1160_v49  ;;  %v1275_v59 = vunpack.c.l.s4 %v1765_v58 }
 0x28f   : > { %1579 = vmatpush1.bf16.msra.mxu1 %v1578_v4  ;;  %v1174_v4 = vld [vmem:[%s2162_s16 + $0x130] sm:$0xff] }
 0x290   : > { %1581 = vmatprep.subr.bf16.mxu1 %v1580_v7  ;;  %v1626_v5 = vpack.c.bf16 %v1174_v4, %v1172_v3  ;;  %v1179_v7 = vld [vmem:[%s2162_s16 + $0x158] sm:$0xff]  ;;  %v1135_v3 = vld [vmem:[#allocation4] sm:$0xf] }
 0x291   : > { %1523 = vmatpush1.bf16.msra.mxu0 %v1522_v62  ;;  %v1170_v62 = vld [vmem:[%s2162_s16 + $0x110] sm:$0xff]  ;;  %v1628_v8 = vpack.c.bf16 %v1179_v7, %v1177_v6  ;;  %v1288_v6 = vld [vmem:[#allocation2] sm:$0xf] (!%p1390_p0) }
 0x292   : > { %1589 = vmatprep.subr.bf16.mxu0 %v1588_v1  ;;  %v1622_v63 = vpack.c.bf16 %v1170_v62, %v1168_v61  ;;  %v1175_v1 = vld [vmem:[%s2162_s16 + $0x138] sm:$0xff]  ;;  %v1276_v61 = vunpack.c.0.s8 %v1275_v59 }
 0x293   : > { %1583 = vmatpush1.bf16.msra.mxu1 %v1582_v16  ;;  %v1624_v2 = vpack.c.bf16 %v1175_v1, %v1173_v0  ;;  %v1182_v16 = vld [vmem:[%s2162_s16 + $0x170] sm:$0xff] }
 0x294   : > { %978 = vmatmul.mubr.f32.vlgmr.msra.gmra.mrb[0].mxu0 %v2254_v46  ;;  %1585 = vmatprep.subr.bf16.mxu1 %v1584_v19  ;;  %v1634_v17 = vpack.c.bf16 %v1182_v16, %v1180_v15  ;;  %v1187_v19 = vld [vmem:[%s2162_s16 + $0x198] sm:$0xff] }
 0x295   : > { %1591 = vmatpush1.bf16.msra.mxu0 %v1590_v12  ;;  %v1181_v12 = vld [vmem:[%s2162_s16 + $0x168] sm:$0xff]  ;;  %v1636_v20 = vpack.c.bf16 %v1187_v19, %v1185_v18 }
 0x296   : > { %1593 = vmatprep.subr.bf16.mxu0 %v1592_v13  ;;  %v1183_v13 = vld [vmem:[%s2162_s16 + $0x178] sm:$0xff] }
 0x297   : > { %1587 = vmatpush1.bf16.msra.mxu1 %v1586_v26  ;;  %v1632_v14 = vpack.c.bf16 %v1183_v13, %v1181_v12  ;;  %v1640_v26 = vpack.c.bf16 %v1191_v25, %v1189_v24 }
 0x299   : > { %1595 = vmatpush1.bf16.msra.mxu0 %v1594_v22  ;;  %v1186_v22 = vld [vmem:[%s2162_s16 + $0x190] sm:$0xff] }
 0x29a   : > { %1597 = vmatprep.subr.bf16.mxu0 %v1596_v23  ;;  %1127 = vmatmul.mubr.f32.vlgmr.msra.gmra.mrb[0].mxu1 %v2254_v46  ;;  %v1163_v46 = vld [vmem:[%s2162_s16 + $0xd8] sm:$0xff]  ;;  %v1638_v23 = vpack.c.bf16 %v1186_v22, %v1184_v21 }
 0x29b   : > { %v1612_v41 = vpack.c.bf16 %v1163_v46, %v1161_v47 }
 0x29d   : > { %1599 = vmatpush1.bf16.msra.mxu0 %v1598_v29  ;;  %v1642_v29 = vpack.c.bf16 %v1190_v28, %v1188_v27 }
 0x29e   : > { %1601 = vmatprep.subr.bf16.mxu0 %v1600_v30  ;;  %v1193_v30 = vld [vmem:[%s2162_s16 + $0x1c8] sm:$0xff] }
 0x29f   : > { %v1644_v32 = vpack.c.bf16 %v1195_v31, %v1193_v30 }
 0x2a1   : > { %1603 = vmatpush1.bf16.msra.mxu0 %v1602_v35  ;;  %v1646_v35 = vpack.c.bf16 %v1194_v34, %v1192_v33 }
 0x2a2   : > { %1605 = vmatprep.subr.bf16.mxu0 %v1604_v36  ;;  %v1197_v36 = vld [vmem:[%s2162_s16 + $0x1e8] sm:$0xff] }
 0x2a3   : > { %v1648_v38 = vpack.c.bf16 %v1199_v37, %v1197_v36 }
 0x2a5   : > { %1607 = vmatpush1.bf16.msra.mxu0 %v1606_v42  ;;  %v1650_v42 = vpack.c.bf16 %v1198_v40, %v1196_v39 }
 0x2a6   : > { %1609 = vmatprep.subr.bf16.mxu0 %v1608_v43 }
 0x2a9   : > { %1611 = vmatpush1.bf16.msra.mxu0 %v1610_v48 }
 0x2aa   : > { %1613 = vmatprep.subr.bf16.mxu0 %v1612_v41 }
 0x2ad   : > { %1615 = vmatpush1.bf16.msra.mxu0 %v1614_v53 }
 0x2ae   : > { %1617 = vmatprep.subr.bf16.mxu0 %v1616_v54 }
 0x2b1   : > { %1619 = vmatpush1.bf16.msra.mxu0 %v1618_v57 }
 0x2b2   : > { %1621 = vmatprep.subr.bf16.mxu0 %v1620_v60  ;;  %v1277_v60 = vlaneseq }
 0x2b4   : > { %v1278_v62 = vshrl.u32 %v1277_v60, 7 }
 0x2b5   : > { %1623 = vmatpush1.bf16.msra.mxu0 %v1622_v63 }
 0x2b6   : > { %1625 = vmatprep.subr.bf16.mxu0 %v1624_v2  ;;  %v1279_v0 = vsub.s32 %v1276_v61, %v1278_v62 }
 0x2b9   : > { %1627 = vmatpush1.bf16.msra.mxu0 %v1626_v5 }
 0x2ba   : > { %1629 = vmatprep.subr.bf16.mxu0 %v1628_v8 }
 0x2bd   : > { %1631 = vmatpush1.bf16.msra.mxu0 %v1630_v11 }
 0x2be   : > { %1633 = vmatprep.subr.bf16.mxu0 %v1632_v14 }
 0x2c1   : > { %1635 = vmatpush1.bf16.msra.mxu0 %v1634_v17 }
 0x2c2   : > { %1637 = vmatprep.subr.bf16.mxu0 %v1636_v20 }
 0x2c5   : > { %1639 = vmatpush1.bf16.msra.mxu0 %v1638_v23 }
 0x2c6   : > { %1641 = vmatprep.subr.bf16.mxu0 %v1640_v26 }
 0x2c9   : > { %1643 = vmatpush1.bf16.msra.mxu0 %v1642_v29 }
 0x2ca   : > { %1645 = vmatprep.subr.bf16.mxu0 %v1644_v32 }
 0x2cd   : > { %1647 = vmatpush1.bf16.msra.mxu0 %v1646_v35 }
 0x2ce   : > { %1649 = vmatprep.subr.bf16.mxu0 %v1648_v38 }
 0x2d1   : > { %1651 = vmatpush1.bf16.msra.mxu0 %v1650_v42 }
 0x367   : > { %v979_v43 = vpop.f32.mrb[0].mxu0 }
 0x368   : > { %v1388_v44 = vmul.f32 -1.442695, %v979_v43  ;;  %v981_v45 = vpop.f32.mrb[1].mxu0 }
 0x369   : > { %v1389_v47 = vmul.f32 -1.442695, %v981_v45 }
 0x36a   : > { %1695 = vpow2.f32 %v1388_v44 }
 0x36b   : > { %1697 = vpow2.f32 %v1389_v47 }
 0x36d   : > { %v1128_v46 = vpop.f32.mrb[0].mxu1 }
 0x36e   : > { %v1130_v48 = vpop.f32.mrb[1].mxu1 }
 0x374   : > { %v1696_v41 = vpop.eup %1695 }
 0x375   : > { %v1698_v49 = vpop.eup %1697  ;;  %v990_v50 = vadd.f32 1.0, %v1696_v41 }
 0x376   : > { %v991_v51 = vadd.f32 1.0, %v1698_v49 }
 0x377   : > { %1699 = vrcp.f32 %v990_v50 }
 0x378   : > { %1701 = vrcp.f32 %v991_v51 }
 0x381   : > { %v1700_v52 = vpop.eup %1699 }
 0x382   : > { %v1702_v53 = vpop.eup %1701  ;;  %v996_v54 = vmul.f32 %v1700_v52, %v979_v43 }
 0x383   : > { %v997_v55 = vmul.f32 %v1702_v53, %v981_v45 }
 0x384   : > { %v1133_v56 = vmul.f32 %v1128_v46, %v996_v54 }
 0x385   : > { %v1134_v57 = vmul.f32 %v1130_v48, %v997_v55 }
 0x387   : > { %1264 = vmatprep.mubr.f32.mxu0 %v1134_v57 }
 0x388   : > { %1265 = vmatmul.mubr.f32.vlgmr.msra.gmra.mrb[2].mxu0 %v1133_v56 }
 0x45b   : > { %v1266_v63 = vpop.f32.mrb[2].mxu0 }
 0x45c   : > { %v1268_v1 = vpop.f32.mrb[3].mxu0 }
 0x45d   : > { %v1273_v2 = vcombine.low %v1266_v63, %v1268_v1  ;;  %1287 = sbr.rel (%p1390_p0) target bundleno = 1134 (0x46e), region = 106 }
 0x45f   : > { %v1280_v4 = vrot.slane %v1273_v2, %v1279_v0 }
 0x461   : > { %v1282_v5 = vadd.f32 %v1280_v4, %v1135_v3 }
 0x463   : > { %1283 = vst [vmem:[#allocation4] sm:$0xf] %v1282_v5 }
 0x46a   : > { %v1289_v7 = vld [vmem:[#allocation4] sm:$0xf] }
 0x46b   : > { %v1290_v8 = vadd.f32 %v1289_v7, %v1288_v6 }
 0x46d   : > { %1291 = vst [vmem:[%s2403_s7] sm:$0xf] %v1290_v8 }
 0x46e PF: > { %p15_p1 = scmp.ge.s32.totalorder %s1825_s28, 5   ;;  %s2415_s24 = smov %s1753_s25 }
 0x46f   : > { %s2416_s25 = smov %s1835_s8  ;;  %s2417_s26 = smov %s1825_s28 }
 0x470   :  { %17 = sbr.rel (!%p15_p1) target bundleno = 2 (0x2), region = 149 }
 0x477   :  { %1303 = vsyncpa [#allocation6], 1 }
 0x478   :  { %1305 = vsyncpa [#allocation6 + $0x1], 1 }

</bundles_post_ra>
